<compile_context>
chip_gen: v7x
topology: tpu7x:2x2x1
jax: 0.10.0
libtpu: 0.0.40
codegen_flags: <defaults>
</compile_context>

<pallas_src>
import functools

import jax
import jax.numpy as jnp
from jax import lax
from jax.experimental import pallas as pl
from jax.experimental.pallas import tpu as pltpu

EPS = 1e-5  # torch.nn.LayerNorm default


def _layer_norm(x, gamma, beta):
    mu = jnp.mean(x, axis=-1, keepdims=True)
    xc = x - mu
    var = jnp.mean(xc * xc, axis=-1, keepdims=True)
    inv = lax.rsqrt(var + EPS)
    return xc * inv * gamma + beta


def skill_policy_kernel(nlayers, nhead, N, L, S,
                        x_ref, mem_ref,
                        wq_ref, bq_ref, wkv_ref, bkv_ref,
                        wo_ref, bo_ref,
                        w1_ref, b1_ref, w2_ref, b2_ref,
                        g2_ref, be2_ref, g3_ref, be3_ref,
                        gf_ref, bf_ref,
                        out_ref,
                        ctx_ref, sc_ref):
    """Fused SkillPolicy forward: nlayers x (cross-attn -> add&norm -> FFN ->
    add&norm), then the final LayerNorm.  All weights stay resident in VMEM.
    Activations are batch-major 2-D row slabs: x (N*L, E), mem (N*S, E)."""
    R, E = x_ref.shape
    hd = E // nhead

    x = x_ref[...]                 # (N*L, E) query stream (batch-major rows)
    mem = mem_ref[...]             # (N*S, E) memory stream

    for li in range(nlayers):      # static layer loop (fused stack)
        # ---- Q projection (1/sqrt(hd) folded) + fused K|V projection ----
        q = jnp.dot(x, wq_ref[li], preferred_element_type=jnp.float32) + bq_ref[li]
        kv = jnp.dot(mem, wkv_ref[li], preferred_element_type=jnp.float32) + bkv_ref[li]
        k = kv[:, :E]              # static lane slices of the fused projection
        v = kv[:, E:]

        # ---- scores: every (batch, head) block written into one slab ----
        for n in range(N):                         # static batch loop
            qn = q[n * L:(n + 1) * L, :]           # contiguous sublane views
            kn = k[n * S:(n + 1) * S, :]
            for h in range(nhead):                 # static head loop
                lo = h * hd
                # (L, hd) x (S, hd) contracted on hd -> (L, S), no transpose op
                s = lax.dot_general(qn[:, lo:lo + hd], kn[:, lo:lo + hd],
                                    (((1,), (1,)), ((), ())),
                                    preferred_element_type=jnp.float32)
                row = (n * nhead + h) * L
                sc_ref[row:row + L, :] = s

        # ---- ONE softmax over the whole (N*nhead*L, S) slab ----
        s_all = sc_ref[...]
        s_all = s_all - jnp.max(s_all, axis=-1, keepdims=True)
        p_all = jnp.exp(s_all)
        denom = jnp.sum(p_all, axis=-1, keepdims=True)
        r = pl.reciprocal(denom, approx=True)      # EUP vrcp
        r = r * (2.0 - denom * r)                  # one Newton step -> ~f32 exact
        p_all = p_all * r

        # ---- P @ V per (batch, head), written into the ctx scratch ----
        for n in range(N):
            vn = v[n * S:(n + 1) * S, :]
            for h in range(nhead):
                lo = h * hd
                row = (n * nhead + h) * L
                ctx_ref[n * L:(n + 1) * L, lo:lo + hd] = jnp.dot(
                    p_all[row:row + L, :], vn[:, lo:lo + hd],
                    preferred_element_type=jnp.float32)

        # ---- output projection (single K=E matmul) + residual + norm2 ----
        attn = jnp.dot(ctx_ref[...], wo_ref[li],
                       preferred_element_type=jnp.float32) + bo_ref[li]
        x = _layer_norm(x + attn, g2_ref[li], be2_ref[li])

        # ---- feedforward (batched) + residual + norm3 ----
        hmid = jnp.maximum(
            jnp.dot(x, w1_ref[li], preferred_element_type=jnp.float32) + b1_ref[li],
            0.0)
        y = jnp.dot(hmid, w2_ref[li], preferred_element_type=jnp.float32) + b2_ref[li]
        x = _layer_norm(x + y, g3_ref[li], be3_ref[li])

    # ---- final LayerNorm, single lane-dense 2-D store ----
    out_ref[...] = _layer_norm(x, gf_ref[...], bf_ref[...])


def _vmem_spec():
    return pl.BlockSpec(memory_space=pltpu.MemorySpace.VMEM)


def _padded_bytes(shape, itemsize=4):
    dims = list(shape)
    if not dims:
        return itemsize
    dims[-1] = -(-dims[-1] // 128) * 128
    if len(dims) >= 2:
        dims[-2] = -(-dims[-2] // 8) * 8
    n = 1
    for d in dims:
        n *= d
    return n * itemsize


def _vmem_limit_bytes(args, N, L, S, E, nhead):
    total = sum(_padded_bytes(a.shape, a.dtype.itemsize) for a in args)
    total += _padded_bytes((N * L, E))              # output
    total += _padded_bytes((N * L, E))              # ctx scratch
    total += _padded_bytes((N * nhead * L, S))      # score scratch
    # 2x for buffering + headroom for compiler temps / intermediates
    return int(min(max(2 * total + (8 << 20), 16 << 20), 64 << 20))


def skill_policy_forward(memory, tgt, packed, nhead):
    """memory: (S, N, E), tgt: (L, N, E)  (seq-first, like PyTorch).
    `packed` comes from pack_params(): pre-transposed, layer-stacked weights."""
    L, N, E = tgt.shape
    S = memory.shape[0]
    nlayers = packed["wq_t"].shape[0]

    # one host-side transpose to batch-major, lane-dense 2-D row slabs
    x2d = jnp.transpose(tgt, (1, 0, 2)).reshape(N * L, E)
    mem2d = jnp.transpose(memory, (1, 0, 2)).reshape(N * S, E)

    args = (x2d, mem2d,
            packed["wq_t"], packed["bq"], packed["wkv_t"], packed["bkv"],
            packed["wo_t"], packed["bo"],
            packed["w1_t"], packed["b1"], packed["w2_t"], packed["b2"],
            packed["g2"], packed["be2"], packed["g3"], packed["be3"],
            packed["gf"], packed["bf"])

    out2d = pl.pallas_call(
        functools.partial(skill_policy_kernel, nlayers, nhead, N, L, S),
        out_shape=jax.ShapeDtypeStruct((N * L, E), jnp.float32),
        in_specs=[_vmem_spec() for _ in args],
        out_specs=_vmem_spec(),
        scratch_shapes=[pltpu.VMEM((N * L, E), jnp.float32),
                        pltpu.VMEM((N * nhead * L, S), jnp.float32)],
        compiler_params=pltpu.CompilerParams(
            vmem_limit_bytes=_vmem_limit_bytes(args, N, L, S, E, nhead)),
    )(*args)

    # back to PyTorch's seq-first (L, N, E) layout (outside the kernel)
    return jnp.transpose(out2d.reshape(N, L, E), (1, 0, 2))


# ------------------- deterministic parameter construction -------------------

def _xavier(key, shape):
    fan_out, fan_in = shape
    limit = (6.0 / (fan_in + fan_out)) ** 0.5
    return jax.random.uniform(key, shape, jnp.float32, -limit, limit)


def make_params(key, dmodel, nhead, nlayers, nhid):
    """PyTorch-layout parameters (used by the pure-JAX reference)."""
    layers = []
    for i in range(nlayers):
        ks = jax.random.split(jax.random.fold_in(key, i), 6)
        in_proj = _xavier(ks[0], (3 * dmodel, dmodel))
        layers.append(dict(
            wq=in_proj[:dmodel],
            wk=in_proj[dmodel:2 * dmodel],
            wv=in_proj[2 * dmodel:],
            bq=jnp.zeros((1, dmodel), jnp.float32),
            bk=jnp.zeros((1, dmodel), jnp.float32),
            bv=jnp.zeros((1, dmodel), jnp.float32),
            wo=_xavier(ks[1], (dmodel, dmodel)),
            bo=jnp.zeros((1, dmodel), jnp.float32),
            w1=_xavier(ks[2], (nhid, dmodel)),
            b1=0.01 * jax.random.normal(ks[3], (1, nhid), jnp.float32),
            w2=_xavier(ks[4], (dmodel, nhid)),
            b2=0.01 * jax.random.normal(ks[5], (1, dmodel), jnp.float32),
            g2=jnp.ones((1, dmodel), jnp.float32),
            be2=jnp.zeros((1, dmodel), jnp.float32),
            g3=jnp.ones((1, dmodel), jnp.float32),
            be3=jnp.zeros((1, dmodel), jnp.float32),
        ))
    return dict(layers=layers,
                g=jnp.ones((1, dmodel), jnp.float32),
                b=jnp.zeros((1, dmodel), jnp.float32))


def pack_params(params, nhead):
    """Kernel-layout params: pre-transposed, layer-stacked, K|V fused into one
    (E, 2E) matmul weight, softmax scale folded into wq/bq (host side, once)."""
    dmodel = params["layers"][0]["wq"].shape[0]
    hd = dmodel // nhead
    scale = 1.0 / float(hd) ** 0.5

    def stack(fn):
        return jnp.stack([fn(p) for p in params["layers"]], axis=0)

    return dict(
        wq_t=stack(lambda p: p["wq"].T * scale),
        bq=stack(lambda p: p["bq"] * scale),
        wkv_t=stack(lambda p: jnp.concatenate([p["wk"].T, p["wv"].T], axis=-1)),
        bkv=stack(lambda p: jnp.concatenate([p["bk"], p["bv"]], axis=-1)),
        wo_t=stack(lambda p: p["wo"].T),
        bo=stack(lambda p: p["bo"]),
        w1_t=stack(lambda p: p["w1"].T),
        b1=stack(lambda p: p["b1"]),
        w2_t=stack(lambda p: p["w2"].T),
        b2=stack(lambda p: p["b2"]),
        g2=stack(lambda p: p["g2"]),
        be2=stack(lambda p: p["be2"]),
        g3=stack(lambda p: p["g3"]),
        be3=stack(lambda p: p["be3"]),
        gf=params["g"],
        bf=params["b"],
    )


# --------------------------- pure-JAX reference ------------------------------

def _ref_forward(memory, tgt, params, nhead):
    def ln(x, g, b):
        mu = x.mean(-1, keepdims=True)
        var = ((x - mu) ** 2).mean(-1, keepdims=True)
        return (x - mu) * lax.rsqrt(var + EPS) * g + b

    L, N, E = tgt.shape
    S = memory.shape[0]
    hd = E // nhead
    out = tgt
    for p in params["layers"]:
        q = out @ p["wq"].T + p["bq"][0]
        k = memory @ p["wk"].T + p["bk"][0]
        v = memory @ p["wv"].T + p["bv"][0]
        q = q.reshape(L, N, nhead, hd).transpose(1, 2, 0, 3)
        k = k.reshape(S, N, nhead, hd).transpose(1, 2, 0, 3)
        v = v.reshape(S, N, nhead, hd).transpose(1, 2, 0, 3)
        s = jnp.einsum("bhld,bhsd->bhls", q, k) / jnp.sqrt(hd).astype(jnp.float32)
        pattn = jax.nn.softmax(s, axis=-1)
        o = jnp.einsum("bhls,bhsd->bhld", pattn, v)          # (N,H,L,hd)
        o = o.transpose(2, 0, 1, 3).reshape(L, N, E)
        o = o @ p["wo"].T + p["bo"][0]
        out = ln(out + o, p["g2"][0], p["be2"][0])
        y = jnp.maximum(out @ p["w1"].T + p["b1"][0], 0.0) @ p["w2"].T + p["b2"][0]
        out = ln(out + y, p["g3"][0], p["be3"][0])
    return ln(out, params["g"][0], params["b"][0])


if __name__ == "__main__":
    dmodel, nhead, nlayers, nhid = 32, 4, 2, 64
    L, S, N = 8, 8, 2   # tgt seq len, memory seq len, batch

    key = jax.random.PRNGKey(0)
    k_mem, k_tgt, k_par = jax.random.split(key, 3)
    memory = jax.random.normal(k_mem, (S, N, dmodel), jnp.float32)
    tgt = jax.random.normal(k_tgt, (L, N, dmodel), jnp.float32)
    params = make_params(k_par, dmodel, nhead, nlayers, nhid)
    packed = pack_params(params, nhead)       # host-side: transpose/fuse/stack once

    out = skill_policy_forward(memory, tgt, packed, nhead)
    out = jax.block_until_ready(out)

    ref = _ref_forward(memory, tgt, params, nhead)
    assert out.shape == (L, N, dmodel)
    assert jnp.allclose(out, ref, rtol=1e-4, atol=1e-4), "mismatch vs reference"

    print("KERNEL_OK")
</pallas_src>

<mosaic_0001>
module attributes {stable_mosaic.version = 11 : i64} {
  func.func @skill_policy_kernel(%arg0: memref<16x32xf32, #tpu.memory_space<vmem>>, %arg1: memref<16x32xf32, #tpu.memory_space<vmem>>, %arg2: memref<2x32x32xf32, #tpu.memory_space<vmem>>, %arg3: memref<2x1x32xf32, #tpu.memory_space<vmem>>, %arg4: memref<2x32x64xf32, #tpu.memory_space<vmem>>, %arg5: memref<2x1x64xf32, #tpu.memory_space<vmem>>, %arg6: memref<2x32x32xf32, #tpu.memory_space<vmem>>, %arg7: memref<2x1x32xf32, #tpu.memory_space<vmem>>, %arg8: memref<2x32x64xf32, #tpu.memory_space<vmem>>, %arg9: memref<2x1x64xf32, #tpu.memory_space<vmem>>, %arg10: memref<2x64x32xf32, #tpu.memory_space<vmem>>, %arg11: memref<2x1x32xf32, #tpu.memory_space<vmem>>, %arg12: memref<2x1x32xf32, #tpu.memory_space<vmem>>, %arg13: memref<2x1x32xf32, #tpu.memory_space<vmem>>, %arg14: memref<2x1x32xf32, #tpu.memory_space<vmem>>, %arg15: memref<2x1x32xf32, #tpu.memory_space<vmem>>, %arg16: memref<1x32xf32, #tpu.memory_space<vmem>>, %arg17: memref<1x32xf32, #tpu.memory_space<vmem>>, %arg18: memref<16x32xf32, #tpu.memory_space<vmem>>, %arg19: memref<16x32xf32, #tpu.memory_space<vmem>>, %arg20: memref<64x8xf32, #tpu.memory_space<vmem>>) attributes {dimension_semantics = [], scalar_prefetch = 0 : i64, scratch_operands = 2 : i64, tpu.core_type = #tpu.core_type<tc>} {
    %c0 = arith.constant 0 : index
    %c0_0 = arith.constant 0 : index
    %0 = vector.load %arg0[%c0, %c0_0] : memref<16x32xf32, #tpu.memory_space<vmem>>, vector<16x32xf32>
    %c0_1 = arith.constant 0 : index
    %c0_2 = arith.constant 0 : index
    %1 = vector.load %arg1[%c0_1, %c0_2] : memref<16x32xf32, #tpu.memory_space<vmem>>, vector<16x32xf32>
    %c0_3 = arith.constant 0 : index
    %c0_4 = arith.constant 0 : index
    %c0_5 = arith.constant 0 : index
    %2 = vector.load %arg2[%c0_3, %c0_4, %c0_5] : memref<2x32x32xf32, #tpu.memory_space<vmem>>, vector<1x32x32xf32>
    %3 = vector.shape_cast %2 : vector<1x32x32xf32> to vector<32x32xf32>
    %cst = arith.constant dense<0.000000e+00> : vector<16x32xf32>
    %4 = tpu.matmul %0, %3, %cst {dimension_numbers = #tpu.dot_dimension_numbers<[1], [0], [0], [1], [0, 0, 1, 1], [], []>} : vector<16x32xf32>, vector<32x32xf32>, vector<16x32xf32> -> vector<16x32xf32>
    %c0_6 = arith.constant 0 : index
    %c0_7 = arith.constant 0 : index
    %c0_8 = arith.constant 0 : index
    %5 = vector.load %arg3[%c0_6, %c0_7, %c0_8] : memref<2x1x32xf32, #tpu.memory_space<vmem>>, vector<1x1x32xf32>
    %6 = vector.shape_cast %5 : vector<1x1x32xf32> to vector<1x32xf32>
    %7 = vector.broadcast %6 : vector<1x32xf32> to vector<16x32xf32>
    %8 = arith.addf %4, %7 : vector<16x32xf32>
    %c0_9 = arith.constant 0 : index
    %c0_10 = arith.constant 0 : index
    %c0_11 = arith.constant 0 : index
    %9 = vector.load %arg4[%c0_9, %c0_10, %c0_11] : memref<2x32x64xf32, #tpu.memory_space<vmem>>, vector<1x32x64xf32>
    %10 = vector.shape_cast %9 : vector<1x32x64xf32> to vector<32x64xf32>
    %cst_12 = arith.constant dense<0.000000e+00> : vector<16x64xf32>
    %11 = tpu.matmul %1, %10, %cst_12 {dimension_numbers = #tpu.dot_dimension_numbers<[1], [0], [0], [1], [0, 0, 1, 1], [], []>} : vector<16x32xf32>, vector<32x64xf32>, vector<16x64xf32> -> vector<16x64xf32>
    %c0_13 = arith.constant 0 : index
    %c0_14 = arith.constant 0 : index
    %c0_15 = arith.constant 0 : index
    %12 = vector.load %arg5[%c0_13, %c0_14, %c0_15] : memref<2x1x64xf32, #tpu.memory_space<vmem>>, vector<1x1x64xf32>
    %13 = vector.shape_cast %12 : vector<1x1x64xf32> to vector<1x64xf32>
    %14 = vector.broadcast %13 : vector<1x64xf32> to vector<16x64xf32>
    %15 = arith.addf %11, %14 : vector<16x64xf32>
    %16 = vector.extract_strided_slice %15 {offsets = [0, 0], sizes = [16, 32], strides = [1, 1]} : vector<16x64xf32> to vector<16x32xf32>
    %17 = vector.extract_strided_slice %15 {offsets = [0, 32], sizes = [16, 32], strides = [1, 1]} : vector<16x64xf32> to vector<16x32xf32>
    %18 = vector.extract_strided_slice %8 {offsets = [0, 0], sizes = [8, 32], strides = [1, 1]} : vector<16x32xf32> to vector<8x32xf32>
    %19 = vector.extract_strided_slice %16 {offsets = [0, 0], sizes = [8, 32], strides = [1, 1]} : vector<16x32xf32> to vector<8x32xf32>
    %20 = vector.extract_strided_slice %18 {offsets = [0, 0], sizes = [8, 8], strides = [1, 1]} : vector<8x32xf32> to vector<8x8xf32>
    %21 = vector.extract_strided_slice %19 {offsets = [0, 0], sizes = [8, 8], strides = [1, 1]} : vector<8x32xf32> to vector<8x8xf32>
    %cst_16 = arith.constant dense<0.000000e+00> : vector<8x8xf32>
    %22 = tpu.matmul %20, %21, %cst_16 {dimension_numbers = #tpu.dot_dimension_numbers<[1], [1], [0], [0], [0, 0, 1, 0], [], []>} : vector<8x8xf32>, vector<8x8xf32>, vector<8x8xf32> -> vector<8x8xf32>
    %c0_17 = arith.constant 0 : index
    %c0_18 = arith.constant 0 : index
    %23 = vector.load %arg20[%c0_17, %c0_18] : memref<64x8xf32, #tpu.memory_space<vmem>>, vector<8x8xf32>
    tpu.vector_store %arg20[%c0_17, %c0_18], %22 {strides = array<i32>} : memref<64x8xf32, #tpu.memory_space<vmem>>, vector<8x8xf32>,
    %24 = vector.extract_strided_slice %18 {offsets = [0, 8], sizes = [8, 8], strides = [1, 1]} : vector<8x32xf32> to vector<8x8xf32>
    %25 = vector.extract_strided_slice %19 {offsets = [0, 8], sizes = [8, 8], strides = [1, 1]} : vector<8x32xf32> to vector<8x8xf32>
    %cst_19 = arith.constant dense<0.000000e+00> : vector<8x8xf32>
    %26 = tpu.matmul %24, %25, %cst_19 {dimension_numbers = #tpu.dot_dimension_numbers<[1], [1], [0], [0], [0, 0, 1, 0], [], []>} : vector<8x8xf32>, vector<8x8xf32>, vector<8x8xf32> -> vector<8x8xf32>
    %c8 = arith.constant 8 : index
    %c0_20 = arith.constant 0 : index
    %27 = vector.load %arg20[%c8, %c0_20] : memref<64x8xf32, #tpu.memory_space<vmem>>, vector<8x8xf32>
    tpu.vector_store %arg20[%c8, %c0_20], %26 {strides = array<i32>} : memref<64x8xf32, #tpu.memory_space<vmem>>, vector<8x8xf32>,
    %28 = vector.extract_strided_slice %18 {offsets = [0, 16], sizes = [8, 8], strides = [1, 1]} : vector<8x32xf32> to vector<8x8xf32>
    %29 = vector.extract_strided_slice %19 {offsets = [0, 16], sizes = [8, 8], strides = [1, 1]} : vector<8x32xf32> to vector<8x8xf32>
    %cst_21 = arith.constant dense<0.000000e+00> : vector<8x8xf32>
    %30 = tpu.matmul %28, %29, %cst_21 {dimension_numbers = #tpu.dot_dimension_numbers<[1], [1], [0], [0], [0, 0, 1, 0], [], []>} : vector<8x8xf32>, vector<8x8xf32>, vector<8x8xf32> -> vector<8x8xf32>
    %c16 = arith.constant 16 : index
    %c0_22 = arith.constant 0 : index
    %31 = vector.load %arg20[%c16, %c0_22] : memref<64x8xf32, #tpu.memory_space<vmem>>, vector<8x8xf32>
    tpu.vector_store %arg20[%c16, %c0_22], %30 {strides = array<i32>} : memref<64x8xf32, #tpu.memory_space<vmem>>, vector<8x8xf32>,
    %32 = vector.extract_strided_slice %18 {offsets = [0, 24], sizes = [8, 8], strides = [1, 1]} : vector<8x32xf32> to vector<8x8xf32>
    %33 = vector.extract_strided_slice %19 {offsets = [0, 24], sizes = [8, 8], strides = [1, 1]} : vector<8x32xf32> to vector<8x8xf32>
    %cst_23 = arith.constant dense<0.000000e+00> : vector<8x8xf32>
    %34 = tpu.matmul %32, %33, %cst_23 {dimension_numbers = #tpu.dot_dimension_numbers<[1], [1], [0], [0], [0, 0, 1, 0], [], []>} : vector<8x8xf32>, vector<8x8xf32>, vector<8x8xf32> -> vector<8x8xf32>
    %c24 = arith.constant 24 : index
    %c0_24 = arith.constant 0 : index
    %35 = vector.load %arg20[%c24, %c0_24] : memref<64x8xf32, #tpu.memory_space<vmem>>, vector<8x8xf32>
    tpu.vector_store %arg20[%c24, %c0_24], %34 {strides = array<i32>} : memref<64x8xf32, #tpu.memory_space<vmem>>, vector<8x8xf32>,
    %36 = vector.extract_strided_slice %8 {offsets = [8, 0], sizes = [8, 32], strides = [1, 1]} : vector<16x32xf32> to vector<8x32xf32>
    %37 = vector.extract_strided_slice %16 {offsets = [8, 0], sizes = [8, 32], strides = [1, 1]} : vector<16x32xf32> to vector<8x32xf32>
    %38 = vector.extract_strided_slice %36 {offsets = [0, 0], sizes = [8, 8], strides = [1, 1]} : vector<8x32xf32> to vector<8x8xf32>
    %39 = vector.extract_strided_slice %37 {offsets = [0, 0], sizes = [8, 8], strides = [1, 1]} : vector<8x32xf32> to vector<8x8xf32>
    %cst_25 = arith.constant dense<0.000000e+00> : vector<8x8xf32>
    %40 = tpu.matmul %38, %39, %cst_25 {dimension_numbers = #tpu.dot_dimension_numbers<[1], [1], [0], [0], [0, 0, 1, 0], [], []>} : vector<8x8xf32>, vector<8x8xf32>, vector<8x8xf32> -> vector<8x8xf32>
    %c32 = arith.constant 32 : index
    %c0_26 = arith.constant 0 : index
    %41 = vector.load %arg20[%c32, %c0_26] : memref<64x8xf32, #tpu.memory_space<vmem>>, vector<8x8xf32>
    tpu.vector_store %arg20[%c32, %c0_26], %40 {strides = array<i32>} : memref<64x8xf32, #tpu.memory_space<vmem>>, vector<8x8xf32>,
    %42 = vector.extract_strided_slice %36 {offsets = [0, 8], sizes = [8, 8], strides = [1, 1]} : vector<8x32xf32> to vector<8x8xf32>
    %43 = vector.extract_strided_slice %37 {offsets = [0, 8], sizes = [8, 8], strides = [1, 1]} : vector<8x32xf32> to vector<8x8xf32>
    %cst_27 = arith.constant dense<0.000000e+00> : vector<8x8xf32>
    %44 = tpu.matmul %42, %43, %cst_27 {dimension_numbers = #tpu.dot_dimension_numbers<[1], [1], [0], [0], [0, 0, 1, 0], [], []>} : vector<8x8xf32>, vector<8x8xf32>, vector<8x8xf32> -> vector<8x8xf32>
    %c40 = arith.constant 40 : index
    %c0_28 = arith.constant 0 : index
    %45 = vector.load %arg20[%c40, %c0_28] : memref<64x8xf32, #tpu.memory_space<vmem>>, vector<8x8xf32>
    tpu.vector_store %arg20[%c40, %c0_28], %44 {strides = array<i32>} : memref<64x8xf32, #tpu.memory_space<vmem>>, vector<8x8xf32>,
    %46 = vector.extract_strided_slice %36 {offsets = [0, 16], sizes = [8, 8], strides = [1, 1]} : vector<8x32xf32> to vector<8x8xf32>
    %47 = vector.extract_strided_slice %37 {offsets = [0, 16], sizes = [8, 8], strides = [1, 1]} : vector<8x32xf32> to vector<8x8xf32>
    %cst_29 = arith.constant dense<0.000000e+00> : vector<8x8xf32>
    %48 = tpu.matmul %46, %47, %cst_29 {dimension_numbers = #tpu.dot_dimension_numbers<[1], [1], [0], [0], [0, 0, 1, 0], [], []>} : vector<8x8xf32>, vector<8x8xf32>, vector<8x8xf32> -> vector<8x8xf32>
    %c48 = arith.constant 48 : index
    %c0_30 = arith.constant 0 : index
    %49 = vector.load %arg20[%c48, %c0_30] : memref<64x8xf32, #tpu.memory_space<vmem>>, vector<8x8xf32>
    tpu.vector_store %arg20[%c48, %c0_30], %48 {strides = array<i32>} : memref<64x8xf32, #tpu.memory_space<vmem>>, vector<8x8xf32>,
    %50 = vector.extract_strided_slice %36 {offsets = [0, 24], sizes = [8, 8], strides = [1, 1]} : vector<8x32xf32> to vector<8x8xf32>
    %51 = vector.extract_strided_slice %37 {offsets = [0, 24], sizes = [8, 8], strides = [1, 1]} : vector<8x32xf32> to vector<8x8xf32>
    %cst_31 = arith.constant dense<0.000000e+00> : vector<8x8xf32>
    %52 = tpu.matmul %50, %51, %cst_31 {dimension_numbers = #tpu.dot_dimension_numbers<[1], [1], [0], [0], [0, 0, 1, 0], [], []>} : vector<8x8xf32>, vector<8x8xf32>, vector<8x8xf32> -> vector<8x8xf32>
    %c56 = arith.constant 56 : index
    %c0_32 = arith.constant 0 : index
    %53 = vector.load %arg20[%c56, %c0_32] : memref<64x8xf32, #tpu.memory_space<vmem>>, vector<8x8xf32>
    tpu.vector_store %arg20[%c56, %c0_32], %52 {strides = array<i32>} : memref<64x8xf32, #tpu.memory_space<vmem>>, vector<8x8xf32>,
    %c0_33 = arith.constant 0 : index
    %c0_34 = arith.constant 0 : index
    %54 = vector.load %arg20[%c0_33, %c0_34] : memref<64x8xf32, #tpu.memory_space<vmem>>, vector<64x8xf32>
    %cst_35 = arith.constant dense<0xFF800000> : vector<64xf32>
    %55 = vector.multi_reduction <maximumf>, %54, %cst_35 [1] : vector<64x8xf32> to vector<64xf32>
    %56 = vector.shape_cast %55 : vector<64xf32> to vector<64x1xf32>
    %57 = vector.broadcast %56 : vector<64x1xf32> to vector<64x8xf32>
    %58 = arith.subf %54, %57 : vector<64x8xf32>
    %59 = math.exp %58 : vector<64x8xf32>
    %cst_36 = arith.constant dense<0.000000e+00> : vector<64xf32>
    %60 = vector.multi_reduction <add>, %59, %cst_36 [1] : vector<64x8xf32> to vector<64xf32>
    %61 = vector.shape_cast %60 : vector<64xf32> to vector<64x1xf32>
    %62 = tpu.reciprocal %61 {approx = true} : vector<64x1xf32> -> vector<64x1xf32>
    %63 = arith.mulf %61, %62 : vector<64x1xf32>
    %cst_37 = arith.constant 2.000000e+00 : f32
    %64 = vector.broadcast %cst_37 : f32 to vector<64x1xf32>
    %65 = arith.subf %64, %63 : vector<64x1xf32>
    %66 = arith.mulf %62, %65 : vector<64x1xf32>
    %67 = vector.broadcast %66 : vector<64x1xf32> to vector<64x8xf32>
    %68 = arith.mulf %59, %67 : vector<64x8xf32>
    %69 = vector.extract_strided_slice %17 {offsets = [0, 0], sizes = [8, 32], strides = [1, 1]} : vector<16x32xf32> to vector<8x32xf32>
    %70 = vector.extract_strided_slice %68 {offsets = [0, 0], sizes = [8, 8], strides = [1, 1]} : vector<64x8xf32> to vector<8x8xf32>
    %71 = vector.extract_strided_slice %69 {offsets = [0, 0], sizes = [8, 8], strides = [1, 1]} : vector<8x32xf32> to vector<8x8xf32>
    %cst_38 = arith.constant dense<0.000000e+00> : vector<8x8xf32>
    %72 = tpu.matmul %70, %71, %cst_38 {dimension_numbers = #tpu.dot_dimension_numbers<[1], [0], [0], [1], [0, 0, 1, 1], [], []>} : vector<8x8xf32>, vector<8x8xf32>, vector<8x8xf32> -> vector<8x8xf32>
    %c0_39 = arith.constant 0 : index
    %c0_40 = arith.constant 0 : index
    %73 = vector.load %arg19[%c0_39, %c0_40] : memref<16x32xf32, #tpu.memory_space<vmem>>, vector<8x8xf32>
    tpu.vector_store %arg19[%c0_39, %c0_40], %72 {strides = array<i32>} : memref<16x32xf32, #tpu.memory_space<vmem>>, vector<8x8xf32>,
    %74 = vector.extract_strided_slice %68 {offsets = [8, 0], sizes = [8, 8], strides = [1, 1]} : vector<64x8xf32> to vector<8x8xf32>
    %75 = vector.extract_strided_slice %69 {offsets = [0, 8], sizes = [8, 8], strides = [1, 1]} : vector<8x32xf32> to vector<8x8xf32>
    %cst_41 = arith.constant dense<0.000000e+00> : vector<8x8xf32>
    %76 = tpu.matmul %74, %75, %cst_41 {dimension_numbers = #tpu.dot_dimension_numbers<[1], [0], [0], [1], [0, 0, 1, 1], [], []>} : vector<8x8xf32>, vector<8x8xf32>, vector<8x8xf32> -> vector<8x8xf32>
    %c0_42 = arith.constant 0 : index
    %c8_43 = arith.constant 8 : index
    %77 = vector.load %arg19[%c0_42, %c8_43] : memref<16x32xf32, #tpu.memory_space<vmem>>, vector<8x8xf32>
    tpu.vector_store %arg19[%c0_42, %c8_43], %76 {strides = array<i32>} : memref<16x32xf32, #tpu.memory_space<vmem>>, vector<8x8xf32>,
    %78 = vector.extract_strided_slice %68 {offsets = [16, 0], sizes = [8, 8], strides = [1, 1]} : vector<64x8xf32> to vector<8x8xf32>
    %79 = vector.extract_strided_slice %69 {offsets = [0, 16], sizes = [8, 8], strides = [1, 1]} : vector<8x32xf32> to vector<8x8xf32>
    %cst_44 = arith.constant dense<0.000000e+00> : vector<8x8xf32>
    %80 = tpu.matmul %78, %79, %cst_44 {dimension_numbers = #tpu.dot_dimension_numbers<[1], [0], [0], [1], [0, 0, 1, 1], [], []>} : vector<8x8xf32>, vector<8x8xf32>, vector<8x8xf32> -> vector<8x8xf32>
    %c0_45 = arith.constant 0 : index
    %c16_46 = arith.constant 16 : index
    %81 = vector.load %arg19[%c0_45, %c16_46] : memref<16x32xf32, #tpu.memory_space<vmem>>, vector<8x8xf32>
    tpu.vector_store %arg19[%c0_45, %c16_46], %80 {strides = array<i32>} : memref<16x32xf32, #tpu.memory_space<vmem>>, vector<8x8xf32>,
    %82 = vector.extract_strided_slice %68 {offsets = [24, 0], sizes = [8, 8], strides = [1, 1]} : vector<64x8xf32> to vector<8x8xf32>
    %83 = vector.extract_strided_slice %69 {offsets = [0, 24], sizes = [8, 8], strides = [1, 1]} : vector<8x32xf32> to vector<8x8xf32>
    %cst_47 = arith.constant dense<0.000000e+00> : vector<8x8xf32>
    %84 = tpu.matmul %82, %83, %cst_47 {dimension_numbers = #tpu.dot_dimension_numbers<[1], [0], [0], [1], [0, 0, 1, 1], [], []>} : vector<8x8xf32>, vector<8x8xf32>, vector<8x8xf32> -> vector<8x8xf32>
    %c0_48 = arith.constant 0 : index
    %c24_49 = arith.constant 24 : index
    %85 = vector.load %arg19[%c0_48, %c24_49] : memref<16x32xf32, #tpu.memory_space<vmem>>, vector<8x8xf32>
    tpu.vector_store %arg19[%c0_48, %c24_49], %84 {strides = array<i32>} : memref<16x32xf32, #tpu.memory_space<vmem>>, vector<8x8xf32>,
    %86 = vector.extract_strided_slice %17 {offsets = [8, 0], sizes = [8, 32], strides = [1, 1]} : vector<16x32xf32> to vector<8x32xf32>
    %87 = vector.extract_strided_slice %68 {offsets = [32, 0], sizes = [8, 8], strides = [1, 1]} : vector<64x8xf32> to vector<8x8xf32>
    %88 = vector.extract_strided_slice %86 {offsets = [0, 0], sizes = [8, 8], strides = [1, 1]} : vector<8x32xf32> to vector<8x8xf32>
    %cst_50 = arith.constant dense<0.000000e+00> : vector<8x8xf32>
    %89 = tpu.matmul %87, %88, %cst_50 {dimension_numbers = #tpu.dot_dimension_numbers<[1], [0], [0], [1], [0, 0, 1, 1], [], []>} : vector<8x8xf32>, vector<8x8xf32>, vector<8x8xf32> -> vector<8x8xf32>
    %c8_51 = arith.constant 8 : index
    %c0_52 = arith.constant 0 : index
    %90 = vector.load %arg19[%c8_51, %c0_52] : memref<16x32xf32, #tpu.memory_space<vmem>>, vector<8x8xf32>
    tpu.vector_store %arg19[%c8_51, %c0_52], %89 {strides = array<i32>} : memref<16x32xf32, #tpu.memory_space<vmem>>, vector<8x8xf32>,
    %91 = vector.extract_strided_slice %68 {offsets = [40, 0], sizes = [8, 8], strides = [1, 1]} : vector<64x8xf32> to vector<8x8xf32>
    %92 = vector.extract_strided_slice %86 {offsets = [0, 8], sizes = [8, 8], strides = [1, 1]} : vector<8x32xf32> to vector<8x8xf32>
    %cst_53 = arith.constant dense<0.000000e+00> : vector<8x8xf32>
    %93 = tpu.matmul %91, %92, %cst_53 {dimension_numbers = #tpu.dot_dimension_numbers<[1], [0], [0], [1], [0, 0, 1, 1], [], []>} : vector<8x8xf32>, vector<8x8xf32>, vector<8x8xf32> -> vector<8x8xf32>
    %c8_54 = arith.constant 8 : index
    %c8_55 = arith.constant 8 : index
    %94 = vector.load %arg19[%c8_54, %c8_55] : memref<16x32xf32, #tpu.memory_space<vmem>>, vector<8x8xf32>
    tpu.vector_store %arg19[%c8_54, %c8_55], %93 {strides = array<i32>} : memref<16x32xf32, #tpu.memory_space<vmem>>, vector<8x8xf32>,
    %95 = vector.extract_strided_slice %68 {offsets = [48, 0], sizes = [8, 8], strides = [1, 1]} : vector<64x8xf32> to vector<8x8xf32>
    %96 = vector.extract_strided_slice %86 {offsets = [0, 16], sizes = [8, 8], strides = [1, 1]} : vector<8x32xf32> to vector<8x8xf32>
    %cst_56 = arith.constant dense<0.000000e+00> : vector<8x8xf32>
    %97 = tpu.matmul %95, %96, %cst_56 {dimension_numbers = #tpu.dot_dimension_numbers<[1], [0], [0], [1], [0, 0, 1, 1], [], []>} : vector<8x8xf32>, vector<8x8xf32>, vector<8x8xf32> -> vector<8x8xf32>
    %c8_57 = arith.constant 8 : index
    %c16_58 = arith.constant 16 : index
    %98 = vector.load %arg19[%c8_57, %c16_58] : memref<16x32xf32, #tpu.memory_space<vmem>>, vector<8x8xf32>
    tpu.vector_store %arg19[%c8_57, %c16_58], %97 {strides = array<i32>} : memref<16x32xf32, #tpu.memory_space<vmem>>, vector<8x8xf32>,
    %99 = vector.extract_strided_slice %68 {offsets = [56, 0], sizes = [8, 8], strides = [1, 1]} : vector<64x8xf32> to vector<8x8xf32>
    %100 = vector.extract_strided_slice %86 {offsets = [0, 24], sizes = [8, 8], strides = [1, 1]} : vector<8x32xf32> to vector<8x8xf32>
    %cst_59 = arith.constant dense<0.000000e+00> : vector<8x8xf32>
    %101 = tpu.matmul %99, %100, %cst_59 {dimension_numbers = #tpu.dot_dimension_numbers<[1], [0], [0], [1], [0, 0, 1, 1], [], []>} : vector<8x8xf32>, vector<8x8xf32>, vector<8x8xf32> -> vector<8x8xf32>
    %c8_60 = arith.constant 8 : index
    %c24_61 = arith.constant 24 : index
    %102 = vector.load %arg19[%c8_60, %c24_61] : memref<16x32xf32, #tpu.memory_space<vmem>>, vector<8x8xf32>
    tpu.vector_store %arg19[%c8_60, %c24_61], %101 {strides = array<i32>} : memref<16x32xf32, #tpu.memory_space<vmem>>, vector<8x8xf32>,
    %c0_62 = arith.constant 0 : index
    %c0_63 = arith.constant 0 : index
    %103 = vector.load %arg19[%c0_62, %c0_63] : memref<16x32xf32, #tpu.memory_space<vmem>>, vector<16x32xf32>
    %c0_64 = arith.constant 0 : index
    %c0_65 = arith.constant 0 : index
    %c0_66 = arith.constant 0 : index
    %104 = vector.load %arg6[%c0_64, %c0_65, %c0_66] : memref<2x32x32xf32, #tpu.memory_space<vmem>>, vector<1x32x32xf32>
    %105 = vector.shape_cast %104 : vector<1x32x32xf32> to vector<32x32xf32>
    %cst_67 = arith.constant dense<0.000000e+00> : vector<16x32xf32>
    %106 = tpu.matmul %103, %105, %cst_67 {dimension_numbers = #tpu.dot_dimension_numbers<[1], [0], [0], [1], [0, 0, 1, 1], [], []>} : vector<16x32xf32>, vector<32x32xf32>, vector<16x32xf32> -> vector<16x32xf32>
    %c0_68 = arith.constant 0 : index
    %c0_69 = arith.constant 0 : index
    %c0_70 = arith.constant 0 : index
    %107 = vector.load %arg7[%c0_68, %c0_69, %c0_70] : memref<2x1x32xf32, #tpu.memory_space<vmem>>, vector<1x1x32xf32>
    %108 = vector.shape_cast %107 : vector<1x1x32xf32> to vector<1x32xf32>
    %109 = vector.broadcast %108 : vector<1x32xf32> to vector<16x32xf32>
    %110 = arith.addf %106, %109 : vector<16x32xf32>
    %111 = arith.addf %0, %110 : vector<16x32xf32>
    %c0_71 = arith.constant 0 : index
    %c0_72 = arith.constant 0 : index
    %c0_73 = arith.constant 0 : index
    %112 = vector.load %arg12[%c0_71, %c0_72, %c0_73] : memref<2x1x32xf32, #tpu.memory_space<vmem>>, vector<1x1x32xf32>
    %113 = vector.shape_cast %112 : vector<1x1x32xf32> to vector<1x32xf32>
    %c0_74 = arith.constant 0 : index
    %c0_75 = arith.constant 0 : index
    %c0_76 = arith.constant 0 : index
    %114 = vector.load %arg13[%c0_74, %c0_75, %c0_76] : memref<2x1x32xf32, #tpu.memory_space<vmem>>, vector<1x1x32xf32>
    %115 = vector.shape_cast %114 : vector<1x1x32xf32> to vector<1x32xf32>
    %cst_77 = arith.constant dense<0.000000e+00> : vector<16xf32>
    %116 = vector.multi_reduction <add>, %111, %cst_77 [1] : vector<16x32xf32> to vector<16xf32>
    %117 = vector.shape_cast %116 : vector<16xf32> to vector<16x1xf32>
    %cst_78 = arith.constant 3.200000e+01 : f32
    %118 = vector.broadcast %cst_78 : f32 to vector<16x1xf32>
    %119 = arith.divf %117, %118 : vector<16x1xf32>
    %120 = vector.broadcast %119 : vector<16x1xf32> to vector<16x32xf32>
    %121 = arith.subf %111, %120 : vector<16x32xf32>
    %122 = arith.mulf %121, %121 : vector<16x32xf32>
    %cst_79 = arith.constant dense<0.000000e+00> : vector<16xf32>
    %123 = vector.multi_reduction <add>, %122, %cst_79 [1] : vector<16x32xf32> to vector<16xf32>
    %124 = vector.shape_cast %123 : vector<16xf32> to vector<16x1xf32>
    %cst_80 = arith.constant 3.200000e+01 : f32
    %125 = vector.broadcast %cst_80 : f32 to vector<16x1xf32>
    %126 = arith.divf %124, %125 : vector<16x1xf32>
    %cst_81 = arith.constant 9.99999974E-6 : f32
    %127 = vector.broadcast %cst_81 : f32 to vector<16x1xf32>
    %128 = arith.addf %126, %127 : vector<16x1xf32>
    %129 = math.rsqrt %128 : vector<16x1xf32>
    %130 = vector.broadcast %129 : vector<16x1xf32> to vector<16x32xf32>
    %131 = arith.mulf %121, %130 : vector<16x32xf32>
    %132 = vector.broadcast %113 : vector<1x32xf32> to vector<16x32xf32>
    %133 = arith.mulf %131, %132 : vector<16x32xf32>
    %134 = vector.broadcast %115 : vector<1x32xf32> to vector<16x32xf32>
    %135 = arith.addf %133, %134 : vector<16x32xf32>
    %c0_82 = arith.constant 0 : index
    %c0_83 = arith.constant 0 : index
    %c0_84 = arith.constant 0 : index
    %136 = vector.load %arg8[%c0_82, %c0_83, %c0_84] : memref<2x32x64xf32, #tpu.memory_space<vmem>>, vector<1x32x64xf32>
    %137 = vector.shape_cast %136 : vector<1x32x64xf32> to vector<32x64xf32>
    %cst_85 = arith.constant dense<0.000000e+00> : vector<16x64xf32>
    %138 = tpu.matmul %135, %137, %cst_85 {dimension_numbers = #tpu.dot_dimension_numbers<[1], [0], [0], [1], [0, 0, 1, 1], [], []>} : vector<16x32xf32>, vector<32x64xf32>, vector<16x64xf32> -> vector<16x64xf32>
    %c0_86 = arith.constant 0 : index
    %c0_87 = arith.constant 0 : index
    %c0_88 = arith.constant 0 : index
    %139 = vector.load %arg9[%c0_86, %c0_87, %c0_88] : memref<2x1x64xf32, #tpu.memory_space<vmem>>, vector<1x1x64xf32>
    %140 = vector.shape_cast %139 : vector<1x1x64xf32> to vector<1x64xf32>
    %141 = vector.broadcast %140 : vector<1x64xf32> to vector<16x64xf32>
    %142 = arith.addf %138, %141 : vector<16x64xf32>
    %cst_89 = arith.constant 0.000000e+00 : f32
    %143 = vector.broadcast %cst_89 : f32 to vector<16x64xf32>
    %144 = arith.maximumf %142, %143 : vector<16x64xf32>
    %c0_90 = arith.constant 0 : index
    %c0_91 = arith.constant 0 : index
    %c0_92 = arith.constant 0 : index
    %145 = vector.load %arg10[%c0_90, %c0_91, %c0_92] : memref<2x64x32xf32, #tpu.memory_space<vmem>>, vector<1x64x32xf32>
    %146 = vector.shape_cast %145 : vector<1x64x32xf32> to vector<64x32xf32>
    %cst_93 = arith.constant dense<0.000000e+00> : vector<16x32xf32>
    %147 = tpu.matmul %144, %146, %cst_93 {dimension_numbers = #tpu.dot_dimension_numbers<[1], [0], [0], [1], [0, 0, 1, 1], [], []>} : vector<16x64xf32>, vector<64x32xf32>, vector<16x32xf32> -> vector<16x32xf32>
    %c0_94 = arith.constant 0 : index
    %c0_95 = arith.constant 0 : index
    %c0_96 = arith.constant 0 : index
    %148 = vector.load %arg11[%c0_94, %c0_95, %c0_96] : memref<2x1x32xf32, #tpu.memory_space<vmem>>, vector<1x1x32xf32>
    %149 = vector.shape_cast %148 : vector<1x1x32xf32> to vector<1x32xf32>
    %150 = vector.broadcast %149 : vector<1x32xf32> to vector<16x32xf32>
    %151 = arith.addf %147, %150 : vector<16x32xf32>
    %152 = arith.addf %135, %151 : vector<16x32xf32>
    %c0_97 = arith.constant 0 : index
    %c0_98 = arith.constant 0 : index
    %c0_99 = arith.constant 0 : index
    %153 = vector.load %arg14[%c0_97, %c0_98, %c0_99] : memref<2x1x32xf32, #tpu.memory_space<vmem>>, vector<1x1x32xf32>
    %154 = vector.shape_cast %153 : vector<1x1x32xf32> to vector<1x32xf32>
    %c0_100 = arith.constant 0 : index
    %c0_101 = arith.constant 0 : index
    %c0_102 = arith.constant 0 : index
    %155 = vector.load %arg15[%c0_100, %c0_101, %c0_102] : memref<2x1x32xf32, #tpu.memory_space<vmem>>, vector<1x1x32xf32>
    %156 = vector.shape_cast %155 : vector<1x1x32xf32> to vector<1x32xf32>
    %cst_103 = arith.constant dense<0.000000e+00> : vector<16xf32>
    %157 = vector.multi_reduction <add>, %152, %cst_103 [1] : vector<16x32xf32> to vector<16xf32>
    %158 = vector.shape_cast %157 : vector<16xf32> to vector<16x1xf32>
    %cst_104 = arith.constant 3.200000e+01 : f32
    %159 = vector.broadcast %cst_104 : f32 to vector<16x1xf32>
    %160 = arith.divf %158, %159 : vector<16x1xf32>
    %161 = vector.broadcast %160 : vector<16x1xf32> to vector<16x32xf32>
    %162 = arith.subf %152, %161 : vector<16x32xf32>
    %163 = arith.mulf %162, %162 : vector<16x32xf32>
    %cst_105 = arith.constant dense<0.000000e+00> : vector<16xf32>
    %164 = vector.multi_reduction <add>, %163, %cst_105 [1] : vector<16x32xf32> to vector<16xf32>
    %165 = vector.shape_cast %164 : vector<16xf32> to vector<16x1xf32>
    %cst_106 = arith.constant 3.200000e+01 : f32
    %166 = vector.broadcast %cst_106 : f32 to vector<16x1xf32>
    %167 = arith.divf %165, %166 : vector<16x1xf32>
    %cst_107 = arith.constant 9.99999974E-6 : f32
    %168 = vector.broadcast %cst_107 : f32 to vector<16x1xf32>
    %169 = arith.addf %167, %168 : vector<16x1xf32>
    %170 = math.rsqrt %169 : vector<16x1xf32>
    %171 = vector.broadcast %170 : vector<16x1xf32> to vector<16x32xf32>
    %172 = arith.mulf %162, %171 : vector<16x32xf32>
    %173 = vector.broadcast %154 : vector<1x32xf32> to vector<16x32xf32>
    %174 = arith.mulf %172, %173 : vector<16x32xf32>
    %175 = vector.broadcast %156 : vector<1x32xf32> to vector<16x32xf32>
    %176 = arith.addf %174, %175 : vector<16x32xf32>
    %c1 = arith.constant 1 : index
    %c0_108 = arith.constant 0 : index
    %c0_109 = arith.constant 0 : index
    %177 = vector.load %arg2[%c1, %c0_108, %c0_109] : memref<2x32x32xf32, #tpu.memory_space<vmem>>, vector<1x32x32xf32>
    %178 = vector.shape_cast %177 : vector<1x32x32xf32> to vector<32x32xf32>
    %cst_110 = arith.constant dense<0.000000e+00> : vector<16x32xf32>
    %179 = tpu.matmul %176, %178, %cst_110 {dimension_numbers = #tpu.dot_dimension_numbers<[1], [0], [0], [1], [0, 0, 1, 1], [], []>} : vector<16x32xf32>, vector<32x32xf32>, vector<16x32xf32> -> vector<16x32xf32>
    %c1_111 = arith.constant 1 : index
    %c0_112 = arith.constant 0 : index
    %c0_113 = arith.constant 0 : index
    %180 = vector.load %arg3[%c1_111, %c0_112, %c0_113] : memref<2x1x32xf32, #tpu.memory_space<vmem>>, vector<1x1x32xf32>
    %181 = vector.shape_cast %180 : vector<1x1x32xf32> to vector<1x32xf32>
    %182 = vector.broadcast %181 : vector<1x32xf32> to vector<16x32xf32>
    %183 = arith.addf %179, %182 : vector<16x32xf32>
    %c1_114 = arith.constant 1 : index
    %c0_115 = arith.constant 0 : index
    %c0_116 = arith.constant 0 : index
    %184 = vector.load %arg4[%c1_114, %c0_115, %c0_116] : memref<2x32x64xf32, #tpu.memory_space<vmem>>, vector<1x32x64xf32>
    %185 = vector.shape_cast %184 : vector<1x32x64xf32> to vector<32x64xf32>
    %cst_117 = arith.constant dense<0.000000e+00> : vector<16x64xf32>
    %186 = tpu.matmul %1, %185, %cst_117 {dimension_numbers = #tpu.dot_dimension_numbers<[1], [0], [0], [1], [0, 0, 1, 1], [], []>} : vector<16x32xf32>, vector<32x64xf32>, vector<16x64xf32> -> vector<16x64xf32>
    %c1_118 = arith.constant 1 : index
    %c0_119 = arith.constant 0 : index
    %c0_120 = arith.constant 0 : index
    %187 = vector.load %arg5[%c1_118, %c0_119, %c0_120] : memref<2x1x64xf32, #tpu.memory_space<vmem>>, vector<1x1x64xf32>
    %188 = vector.shape_cast %187 : vector<1x1x64xf32> to vector<1x64xf32>
    %189 = vector.broadcast %188 : vector<1x64xf32> to vector<16x64xf32>
    %190 = arith.addf %186, %189 : vector<16x64xf32>
    %191 = vector.extract_strided_slice %190 {offsets = [0, 0], sizes = [16, 32], strides = [1, 1]} : vector<16x64xf32> to vector<16x32xf32>
    %192 = vector.extract_strided_slice %190 {offsets = [0, 32], sizes = [16, 32], strides = [1, 1]} : vector<16x64xf32> to vector<16x32xf32>
    %193 = vector.extract_strided_slice %183 {offsets = [0, 0], sizes = [8, 32], strides = [1, 1]} : vector<16x32xf32> to vector<8x32xf32>
    %194 = vector.extract_strided_slice %191 {offsets = [0, 0], sizes = [8, 32], strides = [1, 1]} : vector<16x32xf32> to vector<8x32xf32>
    %195 = vector.extract_strided_slice %193 {offsets = [0, 0], sizes = [8, 8], strides = [1, 1]} : vector<8x32xf32> to vector<8x8xf32>
    %196 = vector.extract_strided_slice %194 {offsets = [0, 0], sizes = [8, 8], strides = [1, 1]} : vector<8x32xf32> to vector<8x8xf32>
    %cst_121 = arith.constant dense<0.000000e+00> : vector<8x8xf32>
    %197 = tpu.matmul %195, %196, %cst_121 {dimension_numbers = #tpu.dot_dimension_numbers<[1], [1], [0], [0], [0, 0, 1, 0], [], []>} : vector<8x8xf32>, vector<8x8xf32>, vector<8x8xf32> -> vector<8x8xf32>
    %c0_122 = arith.constant 0 : index
    %c0_123 = arith.constant 0 : index
    %198 = vector.load %arg20[%c0_122, %c0_123] : memref<64x8xf32, #tpu.memory_space<vmem>>, vector<8x8xf32>
    tpu.vector_store %arg20[%c0_122, %c0_123], %197 {strides = array<i32>} : memref<64x8xf32, #tpu.memory_space<vmem>>, vector<8x8xf32>,
    %199 = vector.extract_strided_slice %193 {offsets = [0, 8], sizes = [8, 8], strides = [1, 1]} : vector<8x32xf32> to vector<8x8xf32>
    %200 = vector.extract_strided_slice %194 {offsets = [0, 8], sizes = [8, 8], strides = [1, 1]} : vector<8x32xf32> to vector<8x8xf32>
    %cst_124 = arith.constant dense<0.000000e+00> : vector<8x8xf32>
    %201 = tpu.matmul %199, %200, %cst_124 {dimension_numbers = #tpu.dot_dimension_numbers<[1], [1], [0], [0], [0, 0, 1, 0], [], []>} : vector<8x8xf32>, vector<8x8xf32>, vector<8x8xf32> -> vector<8x8xf32>
    %c8_125 = arith.constant 8 : index
    %c0_126 = arith.constant 0 : index
    %202 = vector.load %arg20[%c8_125, %c0_126] : memref<64x8xf32, #tpu.memory_space<vmem>>, vector<8x8xf32>
    tpu.vector_store %arg20[%c8_125, %c0_126], %201 {strides = array<i32>} : memref<64x8xf32, #tpu.memory_space<vmem>>, vector<8x8xf32>,
    %203 = vector.extract_strided_slice %193 {offsets = [0, 16], sizes = [8, 8], strides = [1, 1]} : vector<8x32xf32> to vector<8x8xf32>
    %204 = vector.extract_strided_slice %194 {offsets = [0, 16], sizes = [8, 8], strides = [1, 1]} : vector<8x32xf32> to vector<8x8xf32>
    %cst_127 = arith.constant dense<0.000000e+00> : vector<8x8xf32>
    %205 = tpu.matmul %203, %204, %cst_127 {dimension_numbers = #tpu.dot_dimension_numbers<[1], [1], [0], [0], [0, 0, 1, 0], [], []>} : vector<8x8xf32>, vector<8x8xf32>, vector<8x8xf32> -> vector<8x8xf32>
    %c16_128 = arith.constant 16 : index
    %c0_129 = arith.constant 0 : index
    %206 = vector.load %arg20[%c16_128, %c0_129] : memref<64x8xf32, #tpu.memory_space<vmem>>, vector<8x8xf32>
    tpu.vector_store %arg20[%c16_128, %c0_129], %205 {strides = array<i32>} : memref<64x8xf32, #tpu.memory_space<vmem>>, vector<8x8xf32>,
    %207 = vector.extract_strided_slice %193 {offsets = [0, 24], sizes = [8, 8], strides = [1, 1]} : vector<8x32xf32> to vector<8x8xf32>
    %208 = vector.extract_strided_slice %194 {offsets = [0, 24], sizes = [8, 8], strides = [1, 1]} : vector<8x32xf32> to vector<8x8xf32>
    %cst_130 = arith.constant dense<0.000000e+00> : vector<8x8xf32>
    %209 = tpu.matmul %207, %208, %cst_130 {dimension_numbers = #tpu.dot_dimension_numbers<[1], [1], [0], [0], [0, 0, 1, 0], [], []>} : vector<8x8xf32>, vector<8x8xf32>, vector<8x8xf32> -> vector<8x8xf32>
    %c24_131 = arith.constant 24 : index
    %c0_132 = arith.constant 0 : index
    %210 = vector.load %arg20[%c24_131, %c0_132] : memref<64x8xf32, #tpu.memory_space<vmem>>, vector<8x8xf32>
    tpu.vector_store %arg20[%c24_131, %c0_132], %209 {strides = array<i32>} : memref<64x8xf32, #tpu.memory_space<vmem>>, vector<8x8xf32>,
    %211 = vector.extract_strided_slice %183 {offsets = [8, 0], sizes = [8, 32], strides = [1, 1]} : vector<16x32xf32> to vector<8x32xf32>
    %212 = vector.extract_strided_slice %191 {offsets = [8, 0], sizes = [8, 32], strides = [1, 1]} : vector<16x32xf32> to vector<8x32xf32>
    %213 = vector.extract_strided_slice %211 {offsets = [0, 0], sizes = [8, 8], strides = [1, 1]} : vector<8x32xf32> to vector<8x8xf32>
    %214 = vector.extract_strided_slice %212 {offsets = [0, 0], sizes = [8, 8], strides = [1, 1]} : vector<8x32xf32> to vector<8x8xf32>
    %cst_133 = arith.constant dense<0.000000e+00> : vector<8x8xf32>
    %215 = tpu.matmul %213, %214, %cst_133 {dimension_numbers = #tpu.dot_dimension_numbers<[1], [1], [0], [0], [0, 0, 1, 0], [], []>} : vector<8x8xf32>, vector<8x8xf32>, vector<8x8xf32> -> vector<8x8xf32>
    %c32_134 = arith.constant 32 : index
    %c0_135 = arith.constant 0 : index
    %216 = vector.load %arg20[%c32_134, %c0_135] : memref<64x8xf32, #tpu.memory_space<vmem>>, vector<8x8xf32>
    tpu.vector_store %arg20[%c32_134, %c0_135], %215 {strides = array<i32>} : memref<64x8xf32, #tpu.memory_space<vmem>>, vector<8x8xf32>,
    %217 = vector.extract_strided_slice %211 {offsets = [0, 8], sizes = [8, 8], strides = [1, 1]} : vector<8x32xf32> to vector<8x8xf32>
    %218 = vector.extract_strided_slice %212 {offsets = [0, 8], sizes = [8, 8], strides = [1, 1]} : vector<8x32xf32> to vector<8x8xf32>
    %cst_136 = arith.constant dense<0.000000e+00> : vector<8x8xf32>
    %219 = tpu.matmul %217, %218, %cst_136 {dimension_numbers = #tpu.dot_dimension_numbers<[1], [1], [0], [0], [0, 0, 1, 0], [], []>} : vector<8x8xf32>, vector<8x8xf32>, vector<8x8xf32> -> vector<8x8xf32>
    %c40_137 = arith.constant 40 : index
    %c0_138 = arith.constant 0 : index
    %220 = vector.load %arg20[%c40_137, %c0_138] : memref<64x8xf32, #tpu.memory_space<vmem>>, vector<8x8xf32>
    tpu.vector_store %arg20[%c40_137, %c0_138], %219 {strides = array<i32>} : memref<64x8xf32, #tpu.memory_space<vmem>>, vector<8x8xf32>,
    %221 = vector.extract_strided_slice %211 {offsets = [0, 16], sizes = [8, 8], strides = [1, 1]} : vector<8x32xf32> to vector<8x8xf32>
    %222 = vector.extract_strided_slice %212 {offsets = [0, 16], sizes = [8, 8], strides = [1, 1]} : vector<8x32xf32> to vector<8x8xf32>
    %cst_139 = arith.constant dense<0.000000e+00> : vector<8x8xf32>
    %223 = tpu.matmul %221, %222, %cst_139 {dimension_numbers = #tpu.dot_dimension_numbers<[1], [1], [0], [0], [0, 0, 1, 0], [], []>} : vector<8x8xf32>, vector<8x8xf32>, vector<8x8xf32> -> vector<8x8xf32>
    %c48_140 = arith.constant 48 : index
    %c0_141 = arith.constant 0 : index
    %224 = vector.load %arg20[%c48_140, %c0_141] : memref<64x8xf32, #tpu.memory_space<vmem>>, vector<8x8xf32>
    tpu.vector_store %arg20[%c48_140, %c0_141], %223 {strides = array<i32>} : memref<64x8xf32, #tpu.memory_space<vmem>>, vector<8x8xf32>,
    %225 = vector.extract_strided_slice %211 {offsets = [0, 24], sizes = [8, 8], strides = [1, 1]} : vector<8x32xf32> to vector<8x8xf32>
    %226 = vector.extract_strided_slice %212 {offsets = [0, 24], sizes = [8, 8], strides = [1, 1]} : vector<8x32xf32> to vector<8x8xf32>
    %cst_142 = arith.constant dense<0.000000e+00> : vector<8x8xf32>
    %227 = tpu.matmul %225, %226, %cst_142 {dimension_numbers = #tpu.dot_dimension_numbers<[1], [1], [0], [0], [0, 0, 1, 0], [], []>} : vector<8x8xf32>, vector<8x8xf32>, vector<8x8xf32> -> vector<8x8xf32>
    %c56_143 = arith.constant 56 : index
    %c0_144 = arith.constant 0 : index
    %228 = vector.load %arg20[%c56_143, %c0_144] : memref<64x8xf32, #tpu.memory_space<vmem>>, vector<8x8xf32>
    tpu.vector_store %arg20[%c56_143, %c0_144], %227 {strides = array<i32>} : memref<64x8xf32, #tpu.memory_space<vmem>>, vector<8x8xf32>,
    %c0_145 = arith.constant 0 : index
    %c0_146 = arith.constant 0 : index
    %229 = vector.load %arg20[%c0_145, %c0_146] : memref<64x8xf32, #tpu.memory_space<vmem>>, vector<64x8xf32>
    %cst_147 = arith.constant dense<0xFF800000> : vector<64xf32>
    %230 = vector.multi_reduction <maximumf>, %229, %cst_147 [1] : vector<64x8xf32> to vector<64xf32>
    %231 = vector.shape_cast %230 : vector<64xf32> to vector<64x1xf32>
    %232 = vector.broadcast %231 : vector<64x1xf32> to vector<64x8xf32>
    %233 = arith.subf %229, %232 : vector<64x8xf32>
    %234 = math.exp %233 : vector<64x8xf32>
    %cst_148 = arith.constant dense<0.000000e+00> : vector<64xf32>
    %235 = vector.multi_reduction <add>, %234, %cst_148 [1] : vector<64x8xf32> to vector<64xf32>
    %236 = vector.shape_cast %235 : vector<64xf32> to vector<64x1xf32>
    %237 = tpu.reciprocal %236 {approx = true} : vector<64x1xf32> -> vector<64x1xf32>
    %238 = arith.mulf %236, %237 : vector<64x1xf32>
    %cst_149 = arith.constant 2.000000e+00 : f32
    %239 = vector.broadcast %cst_149 : f32 to vector<64x1xf32>
    %240 = arith.subf %239, %238 : vector<64x1xf32>
    %241 = arith.mulf %237, %240 : vector<64x1xf32>
    %242 = vector.broadcast %241 : vector<64x1xf32> to vector<64x8xf32>
    %243 = arith.mulf %234, %242 : vector<64x8xf32>
    %244 = vector.extract_strided_slice %192 {offsets = [0, 0], sizes = [8, 32], strides = [1, 1]} : vector<16x32xf32> to vector<8x32xf32>
    %245 = vector.extract_strided_slice %243 {offsets = [0, 0], sizes = [8, 8], strides = [1, 1]} : vector<64x8xf32> to vector<8x8xf32>
    %246 = vector.extract_strided_slice %244 {offsets = [0, 0], sizes = [8, 8], strides = [1, 1]} : vector<8x32xf32> to vector<8x8xf32>
    %cst_150 = arith.constant dense<0.000000e+00> : vector<8x8xf32>
    %247 = tpu.matmul %245, %246, %cst_150 {dimension_numbers = #tpu.dot_dimension_numbers<[1], [0], [0], [1], [0, 0, 1, 1], [], []>} : vector<8x8xf32>, vector<8x8xf32>, vector<8x8xf32> -> vector<8x8xf32>
    %c0_151 = arith.constant 0 : index
    %c0_152 = arith.constant 0 : index
    %248 = vector.load %arg19[%c0_151, %c0_152] : memref<16x32xf32, #tpu.memory_space<vmem>>, vector<8x8xf32>
    tpu.vector_store %arg19[%c0_151, %c0_152], %247 {strides = array<i32>} : memref<16x32xf32, #tpu.memory_space<vmem>>, vector<8x8xf32>,
    %249 = vector.extract_strided_slice %243 {offsets = [8, 0], sizes = [8, 8], strides = [1, 1]} : vector<64x8xf32> to vector<8x8xf32>
    %250 = vector.extract_strided_slice %244 {offsets = [0, 8], sizes = [8, 8], strides = [1, 1]} : vector<8x32xf32> to vector<8x8xf32>
    %cst_153 = arith.constant dense<0.000000e+00> : vector<8x8xf32>
    %251 = tpu.matmul %249, %250, %cst_153 {dimension_numbers = #tpu.dot_dimension_numbers<[1], [0], [0], [1], [0, 0, 1, 1], [], []>} : vector<8x8xf32>, vector<8x8xf32>, vector<8x8xf32> -> vector<8x8xf32>
    %c0_154 = arith.constant 0 : index
    %c8_155 = arith.constant 8 : index
    %252 = vector.load %arg19[%c0_154, %c8_155] : memref<16x32xf32, #tpu.memory_space<vmem>>, vector<8x8xf32>
    tpu.vector_store %arg19[%c0_154, %c8_155], %251 {strides = array<i32>} : memref<16x32xf32, #tpu.memory_space<vmem>>, vector<8x8xf32>,
    %253 = vector.extract_strided_slice %243 {offsets = [16, 0], sizes = [8, 8], strides = [1, 1]} : vector<64x8xf32> to vector<8x8xf32>
    %254 = vector.extract_strided_slice %244 {offsets = [0, 16], sizes = [8, 8], strides = [1, 1]} : vector<8x32xf32> to vector<8x8xf32>
    %cst_156 = arith.constant dense<0.000000e+00> : vector<8x8xf32>
    %255 = tpu.matmul %253, %254, %cst_156 {dimension_numbers = #tpu.dot_dimension_numbers<[1], [0], [0], [1], [0, 0, 1, 1], [], []>} : vector<8x8xf32>, vector<8x8xf32>, vector<8x8xf32> -> vector<8x8xf32>
    %c0_157 = arith.constant 0 : index
    %c16_158 = arith.constant 16 : index
    %256 = vector.load %arg19[%c0_157, %c16_158] : memref<16x32xf32, #tpu.memory_space<vmem>>, vector<8x8xf32>
    tpu.vector_store %arg19[%c0_157, %c16_158], %255 {strides = array<i32>} : memref<16x32xf32, #tpu.memory_space<vmem>>, vector<8x8xf32>,
    %257 = vector.extract_strided_slice %243 {offsets = [24, 0], sizes = [8, 8], strides = [1, 1]} : vector<64x8xf32> to vector<8x8xf32>
    %258 = vector.extract_strided_slice %244 {offsets = [0, 24], sizes = [8, 8], strides = [1, 1]} : vector<8x32xf32> to vector<8x8xf32>
    %cst_159 = arith.constant dense<0.000000e+00> : vector<8x8xf32>
    %259 = tpu.matmul %257, %258, %cst_159 {dimension_numbers = #tpu.dot_dimension_numbers<[1], [0], [0], [1], [0, 0, 1, 1], [], []>} : vector<8x8xf32>, vector<8x8xf32>, vector<8x8xf32> -> vector<8x8xf32>
    %c0_160 = arith.constant 0 : index
    %c24_161 = arith.constant 24 : index
    %260 = vector.load %arg19[%c0_160, %c24_161] : memref<16x32xf32, #tpu.memory_space<vmem>>, vector<8x8xf32>
    tpu.vector_store %arg19[%c0_160, %c24_161], %259 {strides = array<i32>} : memref<16x32xf32, #tpu.memory_space<vmem>>, vector<8x8xf32>,
    %261 = vector.extract_strided_slice %192 {offsets = [8, 0], sizes = [8, 32], strides = [1, 1]} : vector<16x32xf32> to vector<8x32xf32>
    %262 = vector.extract_strided_slice %243 {offsets = [32, 0], sizes = [8, 8], strides = [1, 1]} : vector<64x8xf32> to vector<8x8xf32>
    %263 = vector.extract_strided_slice %261 {offsets = [0, 0], sizes = [8, 8], strides = [1, 1]} : vector<8x32xf32> to vector<8x8xf32>
    %cst_162 = arith.constant dense<0.000000e+00> : vector<8x8xf32>
    %264 = tpu.matmul %262, %263, %cst_162 {dimension_numbers = #tpu.dot_dimension_numbers<[1], [0], [0], [1], [0, 0, 1, 1], [], []>} : vector<8x8xf32>, vector<8x8xf32>, vector<8x8xf32> -> vector<8x8xf32>
    %c8_163 = arith.constant 8 : index
    %c0_164 = arith.constant 0 : index
    %265 = vector.load %arg19[%c8_163, %c0_164] : memref<16x32xf32, #tpu.memory_space<vmem>>, vector<8x8xf32>
    tpu.vector_store %arg19[%c8_163, %c0_164], %264 {strides = array<i32>} : memref<16x32xf32, #tpu.memory_space<vmem>>, vector<8x8xf32>,
    %266 = vector.extract_strided_slice %243 {offsets = [40, 0], sizes = [8, 8], strides = [1, 1]} : vector<64x8xf32> to vector<8x8xf32>
    %267 = vector.extract_strided_slice %261 {offsets = [0, 8], sizes = [8, 8], strides = [1, 1]} : vector<8x32xf32> to vector<8x8xf32>
    %cst_165 = arith.constant dense<0.000000e+00> : vector<8x8xf32>
    %268 = tpu.matmul %266, %267, %cst_165 {dimension_numbers = #tpu.dot_dimension_numbers<[1], [0], [0], [1], [0, 0, 1, 1], [], []>} : vector<8x8xf32>, vector<8x8xf32>, vector<8x8xf32> -> vector<8x8xf32>
    %c8_166 = arith.constant 8 : index
    %c8_167 = arith.constant 8 : index
    %269 = vector.load %arg19[%c8_166, %c8_167] : memref<16x32xf32, #tpu.memory_space<vmem>>, vector<8x8xf32>
    tpu.vector_store %arg19[%c8_166, %c8_167], %268 {strides = array<i32>} : memref<16x32xf32, #tpu.memory_space<vmem>>, vector<8x8xf32>,
    %270 = vector.extract_strided_slice %243 {offsets = [48, 0], sizes = [8, 8], strides = [1, 1]} : vector<64x8xf32> to vector<8x8xf32>
    %271 = vector.extract_strided_slice %261 {offsets = [0, 16], sizes = [8, 8], strides = [1, 1]} : vector<8x32xf32> to vector<8x8xf32>
    %cst_168 = arith.constant dense<0.000000e+00> : vector<8x8xf32>
    %272 = tpu.matmul %270, %271, %cst_168 {dimension_numbers = #tpu.dot_dimension_numbers<[1], [0], [0], [1], [0, 0, 1, 1], [], []>} : vector<8x8xf32>, vector<8x8xf32>, vector<8x8xf32> -> vector<8x8xf32>
    %c8_169 = arith.constant 8 : index
    %c16_170 = arith.constant 16 : index
    %273 = vector.load %arg19[%c8_169, %c16_170] : memref<16x32xf32, #tpu.memory_space<vmem>>, vector<8x8xf32>
    tpu.vector_store %arg19[%c8_169, %c16_170], %272 {strides = array<i32>} : memref<16x32xf32, #tpu.memory_space<vmem>>, vector<8x8xf32>,
    %274 = vector.extract_strided_slice %243 {offsets = [56, 0], sizes = [8, 8], strides = [1, 1]} : vector<64x8xf32> to vector<8x8xf32>
    %275 = vector.extract_strided_slice %261 {offsets = [0, 24], sizes = [8, 8], strides = [1, 1]} : vector<8x32xf32> to vector<8x8xf32>
    %cst_171 = arith.constant dense<0.000000e+00> : vector<8x8xf32>
    %276 = tpu.matmul %274, %275, %cst_171 {dimension_numbers = #tpu.dot_dimension_numbers<[1], [0], [0], [1], [0, 0, 1, 1], [], []>} : vector<8x8xf32>, vector<8x8xf32>, vector<8x8xf32> -> vector<8x8xf32>
    %c8_172 = arith.constant 8 : index
    %c24_173 = arith.constant 24 : index
    %277 = vector.load %arg19[%c8_172, %c24_173] : memref<16x32xf32, #tpu.memory_space<vmem>>, vector<8x8xf32>
    tpu.vector_store %arg19[%c8_172, %c24_173], %276 {strides = array<i32>} : memref<16x32xf32, #tpu.memory_space<vmem>>, vector<8x8xf32>,
    %c0_174 = arith.constant 0 : index
    %c0_175 = arith.constant 0 : index
    %278 = vector.load %arg19[%c0_174, %c0_175] : memref<16x32xf32, #tpu.memory_space<vmem>>, vector<16x32xf32>
    %c1_176 = arith.constant 1 : index
    %c0_177 = arith.constant 0 : index
    %c0_178 = arith.constant 0 : index
    %279 = vector.load %arg6[%c1_176, %c0_177, %c0_178] : memref<2x32x32xf32, #tpu.memory_space<vmem>>, vector<1x32x32xf32>
    %280 = vector.shape_cast %279 : vector<1x32x32xf32> to vector<32x32xf32>
    %cst_179 = arith.constant dense<0.000000e+00> : vector<16x32xf32>
    %281 = tpu.matmul %278, %280, %cst_179 {dimension_numbers = #tpu.dot_dimension_numbers<[1], [0], [0], [1], [0, 0, 1, 1], [], []>} : vector<16x32xf32>, vector<32x32xf32>, vector<16x32xf32> -> vector<16x32xf32>
    %c1_180 = arith.constant 1 : index
    %c0_181 = arith.constant 0 : index
    %c0_182 = arith.constant 0 : index
    %282 = vector.load %arg7[%c1_180, %c0_181, %c0_182] : memref<2x1x32xf32, #tpu.memory_space<vmem>>, vector<1x1x32xf32>
    %283 = vector.shape_cast %282 : vector<1x1x32xf32> to vector<1x32xf32>
    %284 = vector.broadcast %283 : vector<1x32xf32> to vector<16x32xf32>
    %285 = arith.addf %281, %284 : vector<16x32xf32>
    %286 = arith.addf %176, %285 : vector<16x32xf32>
    %c1_183 = arith.constant 1 : index
    %c0_184 = arith.constant 0 : index
    %c0_185 = arith.constant 0 : index
    %287 = vector.load %arg12[%c1_183, %c0_184, %c0_185] : memref<2x1x32xf32, #tpu.memory_space<vmem>>, vector<1x1x32xf32>
    %288 = vector.shape_cast %287 : vector<1x1x32xf32> to vector<1x32xf32>
    %c1_186 = arith.constant 1 : index
    %c0_187 = arith.constant 0 : index
    %c0_188 = arith.constant 0 : index
    %289 = vector.load %arg13[%c1_186, %c0_187, %c0_188] : memref<2x1x32xf32, #tpu.memory_space<vmem>>, vector<1x1x32xf32>
    %290 = vector.shape_cast %289 : vector<1x1x32xf32> to vector<1x32xf32>
    %cst_189 = arith.constant dense<0.000000e+00> : vector<16xf32>
    %291 = vector.multi_reduction <add>, %286, %cst_189 [1] : vector<16x32xf32> to vector<16xf32>
    %292 = vector.shape_cast %291 : vector<16xf32> to vector<16x1xf32>
    %cst_190 = arith.constant 3.200000e+01 : f32
    %293 = vector.broadcast %cst_190 : f32 to vector<16x1xf32>
    %294 = arith.divf %292, %293 : vector<16x1xf32>
    %295 = vector.broadcast %294 : vector<16x1xf32> to vector<16x32xf32>
    %296 = arith.subf %286, %295 : vector<16x32xf32>
    %297 = arith.mulf %296, %296 : vector<16x32xf32>
    %cst_191 = arith.constant dense<0.000000e+00> : vector<16xf32>
    %298 = vector.multi_reduction <add>, %297, %cst_191 [1] : vector<16x32xf32> to vector<16xf32>
    %299 = vector.shape_cast %298 : vector<16xf32> to vector<16x1xf32>
    %cst_192 = arith.constant 3.200000e+01 : f32
    %300 = vector.broadcast %cst_192 : f32 to vector<16x1xf32>
    %301 = arith.divf %299, %300 : vector<16x1xf32>
    %cst_193 = arith.constant 9.99999974E-6 : f32
    %302 = vector.broadcast %cst_193 : f32 to vector<16x1xf32>
    %303 = arith.addf %301, %302 : vector<16x1xf32>
    %304 = math.rsqrt %303 : vector<16x1xf32>
    %305 = vector.broadcast %304 : vector<16x1xf32> to vector<16x32xf32>
    %306 = arith.mulf %296, %305 : vector<16x32xf32>
    %307 = vector.broadcast %288 : vector<1x32xf32> to vector<16x32xf32>
    %308 = arith.mulf %306, %307 : vector<16x32xf32>
    %309 = vector.broadcast %290 : vector<1x32xf32> to vector<16x32xf32>
    %310 = arith.addf %308, %309 : vector<16x32xf32>
    %c1_194 = arith.constant 1 : index
    %c0_195 = arith.constant 0 : index
    %c0_196 = arith.constant 0 : index
    %311 = vector.load %arg8[%c1_194, %c0_195, %c0_196] : memref<2x32x64xf32, #tpu.memory_space<vmem>>, vector<1x32x64xf32>
    %312 = vector.shape_cast %311 : vector<1x32x64xf32> to vector<32x64xf32>
    %cst_197 = arith.constant dense<0.000000e+00> : vector<16x64xf32>
    %313 = tpu.matmul %310, %312, %cst_197 {dimension_numbers = #tpu.dot_dimension_numbers<[1], [0], [0], [1], [0, 0, 1, 1], [], []>} : vector<16x32xf32>, vector<32x64xf32>, vector<16x64xf32> -> vector<16x64xf32>
    %c1_198 = arith.constant 1 : index
    %c0_199 = arith.constant 0 : index
    %c0_200 = arith.constant 0 : index
    %314 = vector.load %arg9[%c1_198, %c0_199, %c0_200] : memref<2x1x64xf32, #tpu.memory_space<vmem>>, vector<1x1x64xf32>
    %315 = vector.shape_cast %314 : vector<1x1x64xf32> to vector<1x64xf32>
    %316 = vector.broadcast %315 : vector<1x64xf32> to vector<16x64xf32>
    %317 = arith.addf %313, %316 : vector<16x64xf32>
    %cst_201 = arith.constant 0.000000e+00 : f32
    %318 = vector.broadcast %cst_201 : f32 to vector<16x64xf32>
    %319 = arith.maximumf %317, %318 : vector<16x64xf32>
    %c1_202 = arith.constant 1 : index
    %c0_203 = arith.constant 0 : index
    %c0_204 = arith.constant 0 : index
    %320 = vector.load %arg10[%c1_202, %c0_203, %c0_204] : memref<2x64x32xf32, #tpu.memory_space<vmem>>, vector<1x64x32xf32>
    %321 = vector.shape_cast %320 : vector<1x64x32xf32> to vector<64x32xf32>
    %cst_205 = arith.constant dense<0.000000e+00> : vector<16x32xf32>
    %322 = tpu.matmul %319, %321, %cst_205 {dimension_numbers = #tpu.dot_dimension_numbers<[1], [0], [0], [1], [0, 0, 1, 1], [], []>} : vector<16x64xf32>, vector<64x32xf32>, vector<16x32xf32> -> vector<16x32xf32>
    %c1_206 = arith.constant 1 : index
    %c0_207 = arith.constant 0 : index
    %c0_208 = arith.constant 0 : index
    %323 = vector.load %arg11[%c1_206, %c0_207, %c0_208] : memref<2x1x32xf32, #tpu.memory_space<vmem>>, vector<1x1x32xf32>
    %324 = vector.shape_cast %323 : vector<1x1x32xf32> to vector<1x32xf32>
    %325 = vector.broadcast %324 : vector<1x32xf32> to vector<16x32xf32>
    %326 = arith.addf %322, %325 : vector<16x32xf32>
    %327 = arith.addf %310, %326 : vector<16x32xf32>
    %c1_209 = arith.constant 1 : index
    %c0_210 = arith.constant 0 : index
    %c0_211 = arith.constant 0 : index
    %328 = vector.load %arg14[%c1_209, %c0_210, %c0_211] : memref<2x1x32xf32, #tpu.memory_space<vmem>>, vector<1x1x32xf32>
    %329 = vector.shape_cast %328 : vector<1x1x32xf32> to vector<1x32xf32>
    %c1_212 = arith.constant 1 : index
    %c0_213 = arith.constant 0 : index
    %c0_214 = arith.constant 0 : index
    %330 = vector.load %arg15[%c1_212, %c0_213, %c0_214] : memref<2x1x32xf32, #tpu.memory_space<vmem>>, vector<1x1x32xf32>
    %331 = vector.shape_cast %330 : vector<1x1x32xf32> to vector<1x32xf32>
    %cst_215 = arith.constant dense<0.000000e+00> : vector<16xf32>
    %332 = vector.multi_reduction <add>, %327, %cst_215 [1] : vector<16x32xf32> to vector<16xf32>
    %333 = vector.shape_cast %332 : vector<16xf32> to vector<16x1xf32>
    %cst_216 = arith.constant 3.200000e+01 : f32
    %334 = vector.broadcast %cst_216 : f32 to vector<16x1xf32>
    %335 = arith.divf %333, %334 : vector<16x1xf32>
    %336 = vector.broadcast %335 : vector<16x1xf32> to vector<16x32xf32>
    %337 = arith.subf %327, %336 : vector<16x32xf32>
    %338 = arith.mulf %337, %337 : vector<16x32xf32>
    %cst_217 = arith.constant dense<0.000000e+00> : vector<16xf32>
    %339 = vector.multi_reduction <add>, %338, %cst_217 [1] : vector<16x32xf32> to vector<16xf32>
    %340 = vector.shape_cast %339 : vector<16xf32> to vector<16x1xf32>
    %cst_218 = arith.constant 3.200000e+01 : f32
    %341 = vector.broadcast %cst_218 : f32 to vector<16x1xf32>
    %342 = arith.divf %340, %341 : vector<16x1xf32>
    %cst_219 = arith.constant 9.99999974E-6 : f32
    %343 = vector.broadcast %cst_219 : f32 to vector<16x1xf32>
    %344 = arith.addf %342, %343 : vector<16x1xf32>
    %345 = math.rsqrt %344 : vector<16x1xf32>
    %346 = vector.broadcast %345 : vector<16x1xf32> to vector<16x32xf32>
    %347 = arith.mulf %337, %346 : vector<16x32xf32>
    %348 = vector.broadcast %329 : vector<1x32xf32> to vector<16x32xf32>
    %349 = arith.mulf %347, %348 : vector<16x32xf32>
    %350 = vector.broadcast %331 : vector<1x32xf32> to vector<16x32xf32>
    %351 = arith.addf %349, %350 : vector<16x32xf32>
    %c0_220 = arith.constant 0 : index
    %c0_221 = arith.constant 0 : index
    %352 = vector.load %arg16[%c0_220, %c0_221] : memref<1x32xf32, #tpu.memory_space<vmem>>, vector<1x32xf32>
    %c0_222 = arith.constant 0 : index
    %c0_223 = arith.constant 0 : index
    %353 = vector.load %arg17[%c0_222, %c0_223] : memref<1x32xf32, #tpu.memory_space<vmem>>, vector<1x32xf32>
    %cst_224 = arith.constant dense<0.000000e+00> : vector<16xf32>
    %354 = vector.multi_reduction <add>, %351, %cst_224 [1] : vector<16x32xf32> to vector<16xf32>
    %355 = vector.shape_cast %354 : vector<16xf32> to vector<16x1xf32>
    %cst_225 = arith.constant 3.200000e+01 : f32
    %356 = vector.broadcast %cst_225 : f32 to vector<16x1xf32>
    %357 = arith.divf %355, %356 : vector<16x1xf32>
    %358 = vector.broadcast %357 : vector<16x1xf32> to vector<16x32xf32>
    %359 = arith.subf %351, %358 : vector<16x32xf32>
    %360 = arith.mulf %359, %359 : vector<16x32xf32>
    %cst_226 = arith.constant dense<0.000000e+00> : vector<16xf32>
    %361 = vector.multi_reduction <add>, %360, %cst_226 [1] : vector<16x32xf32> to vector<16xf32>
    %362 = vector.shape_cast %361 : vector<16xf32> to vector<16x1xf32>
    %cst_227 = arith.constant 3.200000e+01 : f32
    %363 = vector.broadcast %cst_227 : f32 to vector<16x1xf32>
    %364 = arith.divf %362, %363 : vector<16x1xf32>
    %cst_228 = arith.constant 9.99999974E-6 : f32
    %365 = vector.broadcast %cst_228 : f32 to vector<16x1xf32>
    %366 = arith.addf %364, %365 : vector<16x1xf32>
    %367 = math.rsqrt %366 : vector<16x1xf32>
    %368 = vector.broadcast %367 : vector<16x1xf32> to vector<16x32xf32>
    %369 = arith.mulf %359, %368 : vector<16x32xf32>
    %370 = vector.broadcast %352 : vector<1x32xf32> to vector<16x32xf32>
    %371 = arith.mulf %369, %370 : vector<16x32xf32>
    %372 = vector.broadcast %353 : vector<1x32xf32> to vector<16x32xf32>
    %373 = arith.addf %371, %372 : vector<16x32xf32>
    %c0_229 = arith.constant 0 : index
    %c0_230 = arith.constant 0 : index
    %374 = vector.load %arg18[%c0_229, %c0_230] : memref<16x32xf32, #tpu.memory_space<vmem>>, vector<16x32xf32>
    tpu.vector_store %arg18[%c0_229, %c0_230], %373 {strides = array<i32>} : memref<16x32xf32, #tpu.memory_space<vmem>>, vector<16x32xf32>,
    return
  }
}

</mosaic_0001>

<bundles_post_ra>
// kernel: tpu_custom_call.1
= control target key start
LH: loop header
LB: loop body
LE: loop exit
PB: predicated region body
PF: predicated region fallthrough
CT: control target
= control target key end

     0   :  { %s5701_s0 = inlined_call_operand.hbm [shape: f32[16,32], index: 0, kind: input, shape index: {}]   ;;  %s5702_s1 = inlined_call_operand.hbm [shape: f32[16,32], index: 1, kind: input, shape index: {}]   ;;  %s5703_s2 = inlined_call_operand.vmem [shape: f32[2,32,32], index: 2, kind: input, shape index: {}]   ;;  %s5704_s3 = inlined_call_operand.vmem [shape: f32[2,1,32], index: 3, kind: input, shape index: {}]   ;;  %s5705_s4 = inlined_call_operand.vmem [shape: f32[2,32,64], index: 4, kind: input, shape index: {}]   ;;  %s5706_s5 = inlined_call_operand.vmem [shape: f32[2,1,64], index: 5, kind: input, shape index: {}]   ;;  %s5707_s6 = inlined_call_operand.vmem [shape: f32[2,32,32], index: 6, kind: input, shape index: {}]   ;;  %s5708_s7 = inlined_call_operand.vmem [shape: f32[2,1,32], index: 7, kind: input, shape index: {}]   ;;  %s5709_s8 = inlined_call_operand.hbm [shape: f32[2,32,64], index: 8, kind: input, shape index: {}]   ;;  %s5710_s9 = inlined_call_operand.vmem [shape: f32[2,1,64], index: 9, kind: input, shape index: {}]   ;;  %s5711_s10 = inlined_call_operand.vmem [shape: f32[2,64,32], index: 10, kind: input, shape index: {}]   ;;  %s5712_s11 = inlined_call_operand.vmem [shape: f32[2,1,32], index: 11, kind: input, shape index: {}]   ;;  %s5713_s12 = inlined_call_operand.vmem [shape: f32[2,1,32], index: 12, kind: input, shape index: {}]   ;;  %s5714_s13 = inlined_call_operand.vmem [shape: f32[2,1,32], index: 13, kind: input, shape index: {}]   ;;  %s5715_s14 = inlined_call_operand.vmem [shape: f32[2,1,32], index: 14, kind: input, shape index: {}]   ;;  %s5716_s15 = inlined_call_operand.vmem [shape: f32[2,1,32], index: 15, kind: input, shape index: {}]   ;;  %s5717_s16 = inlined_call_operand.vmem [shape: f32[1,32], index: 16, kind: input, shape index: {}]   ;;  %s5718_s17 = inlined_call_operand.vmem [shape: f32[1,32], index: 17, kind: input, shape index: {}]   ;;  %s5719_s18 = inlined_call_operand.hbm [shape: f32[16,32], index: 18, kind: output, shape index: {}]  }
   0x1   :  { %5733 = sst [smem:[#allocation14_spill]] %s5701_s0 }
   0x2   :  { %5734 = sst [smem:[#allocation15_spill]] %s5702_s1 }
   0x3   :  { %5735 = sst [smem:[#allocation16_spill]] %s5703_s2 }
   0x4   :  { %5736 = sst [smem:[#allocation17_spill]] %s5719_s18 }
   0x5   :  { %23 = vsyncpa [#allocation5], 0 }
   0x6   :  { %24 = vsyncpa [#allocation8], 0 }
   0x7   :  { %25 = vsyncpa [#allocation6], 0  ;;  %s4906_s27 = smov [#allocation7]   ;;  %s4907_s29 = smov [#allocation4]  }
   0x8   :  { %s43_s28 = sshll.u32 %s4906_s27, 4  ;;  %s31_s30 = sshll.u32 %s4907_s29, 4  ;;  %s44_s28 = int_to_ptr.vmem [resolvable:$true] %s43_s28  ;;  %s5018_s30 = int_to_ptr.vmem [resolvable:$true] %s31_s30 }
   0x9   :  { %s5737_s1 = sld [smem:[#allocation15_spill]] }
   0xf   :  { %s4812_s20 = scalar_lea.hbm %s5737_s1, 256 }
  0x10   :  { %p4813_p0 = scmp.ne.s32.totalorder %s5737_s1, %s4812_s20  ;;  %p4816_p1 = scmp.lt.u32.totalorder %s4812_s20, %s5737_s1 }
  0x12   :  { %p4818_p2 = pnand %p4816_p1, %p4813_p0 }
  0x14   :  { %4821 = shalt.err (!%p4818_p2)
}
  0x15   :  { %s4822_s24 = scalar_lea.vmem %s44_s28, 256  ;;  %p4827_p4 = scmp.lt.s32.totalorder %s44_s28, %s44_s28 }
  0x16   :  { %p4823_p3 = scmp.ne.s32.totalorder %s44_s28, %s4822_s24  ;;  %p4828_p5 = scmp.lt.s32.totalorder %s4822_s24, %s4822_s24 }
  0x18   :  { %p4829_p6 = por %p4828_p5, %p4827_p4 }
  0x1a   :  { %p4830_p7 = pnand %p4829_p6, %p4823_p3 }
  0x1c   :  { %4833 = shalt.err (!%p4830_p7)
}
  0x1d   :  { %s5724_s25 = smov 128   ;;  %s5731_s26 = smov 8  }
  0x1e   :  { %49 = dma.hbm_to_vmem [thread:$0]  %s5737_s1, 256, %s44_s28, [#allocation8], %s5724_s25, %s5724_s25, %s5731_s26  }
  0x1f   :  { %s5738_s20 = sld [smem:[#allocation14_spill]] }
  0x25   :  { %s4834_s21 = scalar_lea.hbm %s5738_s20, 256 }
  0x26   :  { %p4835_p8 = scmp.ne.s32.totalorder %s5738_s20, %s4834_s21  ;;  %p4838_p9 = scmp.lt.u32.totalorder %s4834_s21, %s5738_s20 }
  0x28   :  { %p4840_p10 = pnand %p4838_p9, %p4835_p8 }
  0x2a   :  { %4843 = shalt.err (!%p4840_p10)
}
  0x2b   :  { %s4844_s18 = scalar_lea.vmem %s5018_s30, 256  ;;  %p4849_p12 = scmp.lt.s32.totalorder %s5018_s30, %s5018_s30 }
  0x2c   :  { %p4845_p11 = scmp.ne.s32.totalorder %s5018_s30, %s4844_s18  ;;  %p4850_p13 = scmp.lt.s32.totalorder %s4844_s18, %s4844_s18 }
  0x2e   :  { %p4851_p0 = por %p4850_p13, %p4849_p12 }
  0x30   :  { %p4852_p1 = pnand %p4851_p0, %p4845_p11 }
  0x32   :  { %4855 = shalt.err (!%p4852_p1)
}
  0x33   :  { %37 = dma.hbm_to_vmem [thread:$0]  %s5738_s20, 256, %s5018_s30, [#allocation5], %s5724_s25, %s5724_s25, %s5731_s26  }
  0x34   :  { %s4910_s27 = smov [#allocation9]   ;;  %s4856_s21 = scalar_lea.hbm %s5709_s8, 1024 }
  0x35   :  { %s67_s29 = sshll.u32 %s4910_s27, 4  ;;  %p4857_p2 = scmp.ne.s32.totalorder %s5709_s8, %s4856_s21  ;;  %s68_s29 = int_to_ptr.vmem [resolvable:$true] %s67_s29 }
  0x36   :  { %p4860_p3 = scmp.lt.u32.totalorder %s4856_s21, %s5709_s8 }
  0x38   :  { %p4862_p4 = pnand %p4860_p3, %p4857_p2 }
  0x3a   :  { %4865 = shalt.err (!%p4862_p4)
}
  0x3b   :  { %s4866_s24 = scalar_lea.vmem %s68_s29, 1024  ;;  %p4871_p6 = scmp.lt.s32.totalorder %s68_s29, %s68_s29 }
  0x3c   :  { %p4867_p5 = scmp.ne.s32.totalorder %s68_s29, %s4866_s24  ;;  %p4872_p7 = scmp.lt.s32.totalorder %s4866_s24, %s4866_s24 }
  0x3e   :  { %p4873_p8 = por %p4872_p7, %p4871_p6 }
  0x40   :  { %p4874_p9 = pnand %p4873_p8, %p4867_p5 }
  0x42   :  { %4877 = shalt.err (!%p4874_p9)
}
  0x43   :  { %73 = dma.hbm_to_vmem [thread:$0]  %s5709_s8, 1024, %s68_s29, [#allocation8], %s5724_s25, %s5724_s25, %s5731_s26  }
  0x44   :  { %4900 = dma.done.wait [#allocation5], 256  }
  0x45   :  { %4901 = vsyncadd [#allocation5], 4294967040 }
  0x46   :  { %4902 = dma.done.wait [#allocation8], 1280  }
  0x47   :  { %4903 = vsyncadd [#allocation8], 4294966016  ;;  %vm116_vm0 = vcmask 261120   ;;  %s5739_s27 = sld [smem:[#allocation16_spill]]  ;;  %v5082_v5 = vld [vmem:[#allocation4] sm:$0xff]  ;;  %v198_v7 = vld [vmem:[%s5705_s4] sm:$0xff] }
  0x48   :  { %4337 = vmatprep.mubr.msk.f32.mxu1 %vm116_vm0, %v5082_v5  ;;  %v199_v8 = vld [vmem:[%s5705_s4 + $0x8] sm:$0xff]  ;;  %v200_v10 = vld [vmem:[%s5705_s4 + $0x10] sm:$0xff]  ;;  %v201_v11 = vld [vmem:[%s5705_s4 + $0x18] sm:$0xff]  ;;  %v4911_v16 = vmov 0.0   ;;  %vm4912_vm1 = vmmov 0   ;;  %s4913_s21 = smov 104  }
  0x49   :  { %v4623_v9 = vpack.c.bf16 %v199_v8, %v198_v7  ;;  %v5098_v12 = vld [vmem:[#allocation4 + $0x8] sm:$0xff]  ;;  %v4627_v13 = vpack.c.bf16 %v201_v11, %v200_v10  ;;  %v5100_v14 = vld [vmem:[#allocation7] sm:$0xff]  ;;  %v5106_v15 = vld [vmem:[#allocation7 + $0x8] sm:$0xff]  ;;  %4351 = vmatprep.subr.mxu0 %v4911_v16  ;;  %4353 = vmatprep.mubr.msk.f32.mxu0 %vm4912_vm1, %v4911_v16  ;;  %s4914_s22 = smov 120   ;;  %vm290_vm2 = vcmask 64512   ;;  %s4915_s29 = smov 112  }
  0x4a   :  { %v4080_v17 = vld [vmem:[%s5704_s3] ss:$0 sm:$0xff]  ;;  %s4916_s2 = smov 96   ;;  %s4917_s23 = smov 80   ;;  %vm1196_vm3 = vcmask 130112   ;;  %vm1278_vm4 = vcmask 195712  }
  0x4b   :  { %v4083_v21 = vld [vmem:[%s5706_s5] ss:$0 sm:$0xff]  ;;  %s5725_s24 = smov 88   ;;  %s4919_s30 = smov 72   ;;  %vm1360_vm5 = vcmask 261312   ;;  %vm1932_vm6 = vcmask 523264  }
  0x4c   :  { %s5729_s19 = smov 16   ;;  %s5727_s20 = smov 24  }
  0x4d   :  { %v105_v0 = vld [vmem:[%s5739_s27] sm:$0xff]  ;;  %v106_v1 = vld [vmem:[%s5739_s27 + $0x8] sm:$0xff]  ;;  %v107_v2 = vld [vmem:[%s5739_s27 + $0x10] sm:$0xff]  ;;  %s5743_s25 = smov 24  }
  0x4e   :  { %v4615_v3 = vpack.c.bf16 %v106_v1, %v105_v0  ;;  %v108_v4 = vld [vmem:[%s5739_s27 + $0x18] sm:$0xff] }
  0x4f   :  { %v4619_v6 = vpack.c.bf16 %v108_v4, %v107_v2 }
  0x50   :  { %4616 = vmatprep.subr.bf16.mxu1 %v4615_v3 }
  0x51   :  { %4618 = vmatpush3.bf16.msra.mxu1 %v4615_v3 }
  0x52   :  { %4620 = vmatprep.subr.bf16.mxu1 %v4619_v6 }
  0x55   :  { %4622 = vmatpush3.bf16.msra.mxu1 %v4619_v6 }
  0x56   :  { %4624 = vmatprep.subr.bf16.mxu1 %v4623_v9 }
  0x58   :  { %4338 = vmatmul.mubr.msk.f32.vlgmr.msra.gmra.mrb[0].mxu1 %vm116_vm0, %v5098_v12 }
  0x59   :  { %4626 = vmatpush3.bf16.msra.mxu1 %v4623_v9  ;;  %4348 = vmatprep.mubr.msk.f32.mxu1 %vm116_vm0, %v5100_v14 }
  0x5a   :  { %4628 = vmatprep.subr.bf16.mxu1 %v4627_v13 }
  0x5d   :  { %4630 = vmatpush3.bf16.msra.mxu1 %v4627_v13 }
  0x5e   :  { %4356 = vmatprep.subr.mxu1 %v4911_v16 }
  0x60   :  { %4349 = vmatmul.mubr.msk.f32.vlgmr.msra.gmra.mrb[2].mxu1 %vm116_vm0, %v5106_v15 }
  0x61   :  { %4358 = vmatprep.mubr.msk.f32.mxu1 %vm4912_vm1, %v4911_v16 }
 0x12b   :  { %v4339_v18 = vpop.f32.mrb[0].mxu1 }
 0x12c   :  { %v189_v19 = vpop.f32.mrb[1].mxu1  ;;  %v195_v25 = vadd.f32 %v4339_v18, %v4080_v17 }
 0x12d   :  { %v190_v20 = vadd.f32 %v4080_v17, %v189_v19 }
 0x12f   :  { %526 = vrot.lane.b32.xlu1 %v190_v20, %s4913_s21  ;;  %368 = vrot.lane.b32.xlu0 %v190_v20, %s4914_s22 }
 0x133   :  { %v4350_v22 = vpop.f32.mrb[2].mxu1 }
 0x134   :  { %v281_v23 = vpop.f32.mrb[3].mxu1  ;;  %v5139_v26 = vadd.f32 %v4350_v22, %v4083_v21 }
 0x135   :  { %v5124_v24 = vadd.f32 %v4083_v21, %v281_v23 }
 0x137   :  { %4352 = vmatpush3.xpose.msk.msra.mxu0 %vm290_vm2, %v5124_v24  ;;  %449 = vrot.lane.b32.xlu1 %v5124_v24, %s4915_s29 }
 0x138   :  { %370 = vrot.lane.b32.xlu0 %v5124_v24, %s4914_s22  ;;  %4361 = vmatprep.subr.mxu0 %v4911_v16 }
 0x13a   :  { %4354 = vmatmul.mubr.msk.f32.vlgmr.msra.gmra.mrb[0].mxu0 %vm290_vm2, %v190_v20 }
 0x13b   :  { %528 = vrot.lane.b32.xlu1 %v5124_v24, %s4913_s21  ;;  %4363 = vmatprep.mubr.msk.f32.mxu0 %vm4912_vm1, %v4911_v16 }
 0x13c   :  { %447 = vrot.lane.b32.xlu0 %v190_v20, %s4915_s29 }
 0x13f   :  { %682 = vrot.lane.b32.xlu1 %v195_v25, %s4914_s22 }
 0x140   :  { %684 = vrot.lane.b32.xlu0 %v5139_v26, %s4914_s22 }
 0x143   :  { %842 = vrot.lane.b32.xlu1 %v5139_v26, %s4913_s21 }
 0x144   :  { %763 = vrot.lane.b32.xlu0 %v5139_v26, %s4915_s29 }
 0x147   :  { %840 = vrot.lane.b32.xlu1 %v195_v25, %s4913_s21 }
 0x148   :  { %761 = vrot.lane.b32.xlu0 %v195_v25, %s4915_s29 }
 0x1a1   :  { %v527_v27 = vpop.permute.xlu1 %526  ;;  %v369_v28 = vpop.permute.xlu0 %368 }
 0x1a9   :  { %v450_v29 = vpop.permute.xlu1 %449 }
 0x1aa   :  { %v371_v30 = vpop.permute.xlu0 %370  ;;  %4362 = vmatpush3.xpose.msk.msra.mxu0 %vm290_vm2, %v450_v29 }
 0x1ab   :  { %4357 = vmatpush3.xpose.msk.msra.mxu1 %vm290_vm2, %v371_v30  ;;  %4371 = vmatprep.subr.mxu0 %v4911_v16 }
 0x1ac   :  { %4366 = vmatprep.subr.mxu1 %v4911_v16 }
 0x1ad   :  { %v529_v31 = vpop.permute.xlu1 %528 }
 0x1ae   :  { %4359 = vmatmul.mubr.msk.f32.vlgmr.msra.gmra.mrb[4].mxu1 %vm290_vm2, %v369_v28  ;;  %v448_v32 = vpop.permute.xlu0 %447 }
 0x1af   :  { %4364 = vmatmul.mubr.msk.f32.vlgmr.msra.gmra.mrb[2].mxu0 %vm290_vm2, %v448_v32  ;;  %4367 = vmatpush3.xpose.msk.msra.mxu1 %vm290_vm2, %v529_v31 }
 0x1b0   :  { %4372 = vmatpush3.xpose.msk.msra.mxu0 %vm290_vm2, %v5139_v26  ;;  %4368 = vmatprep.mubr.msk.f32.mxu1 %vm4912_vm1, %v4911_v16 }
 0x1b1   :  { %v683_v33 = vpop.permute.xlu1 %682  ;;  %4376 = vmatprep.subr.mxu1 %v4911_v16  ;;  %4373 = vmatprep.mubr.msk.f32.mxu0 %vm4912_vm1, %v4911_v16 }
 0x1b2   :  { %4369 = vmatmul.mubr.msk.f32.vlgmr.msra.gmra.mrb[6].mxu1 %vm290_vm2, %v527_v27  ;;  %v685_v34 = vpop.permute.xlu0 %684  ;;  %4381 = vmatprep.subr.mxu0 %v4911_v16 }
 0x1b3   :  { %4374 = vmatmul.mubr.msk.f32.vlgmr.msra.gmra.mrb[4].mxu0 %vm290_vm2, %v195_v25  ;;  %4377 = vmatpush3.xpose.msk.msra.mxu1 %vm290_vm2, %v685_v34 }
 0x1b4   :  { %4378 = vmatprep.mubr.msk.f32.mxu1 %vm4912_vm1, %v4911_v16  ;;  %4386 = vmatprep.subr.mxu1 %v4911_v16 }
 0x1b5   :  { %v843_v35 = vpop.permute.xlu1 %842  ;;  %4383 = vmatprep.mubr.msk.f32.mxu0 %vm4912_vm1, %v4911_v16 }
 0x1b6   :  { %4379 = vmatmul.mubr.msk.f32.vlgmr.msra.gmra.mrb[8].mxu1 %vm290_vm2, %v683_v33  ;;  %v764_v36 = vpop.permute.xlu0 %763 }
 0x1b7   :  { %4382 = vmatpush3.xpose.msk.msra.mxu0 %vm290_vm2, %v764_v36  ;;  %4387 = vmatpush3.xpose.msk.msra.mxu1 %vm290_vm2, %v843_v35 }
 0x1b8   :  { %4388 = vmatprep.mubr.msk.f32.mxu1 %vm4912_vm1, %v4911_v16  ;;  %4391 = vmatprep.subr.mxu0 %v4911_v16 }
 0x1b9   :  { %v841_v37 = vpop.permute.xlu1 %840  ;;  %4396 = vmatprep.subr.mxu1 %v4911_v16 }
 0x1ba   :  { %v762_v38 = vpop.permute.xlu0 %761  ;;  %4389 = vmatmul.mubr.msk.f32.vlgmr.msra.gmra.mrb[10].mxu1 %vm290_vm2, %v841_v37 }
 0x1bb   :  { %4384 = vmatmul.mubr.msk.f32.vlgmr.msra.gmra.mrb[6].mxu0 %vm290_vm2, %v762_v38  ;;  %4398 = vmatprep.mubr.msk.f32.mxu1 %vm4912_vm1, %v4911_v16 }
 0x1bc   :  { %4393 = vmatprep.mubr.msk.f32.mxu0 %vm4912_vm1, %v4911_v16 }
 0x20d   :  { %v363_v39 = vpop.f32.mrb[0].mxu0 }
 0x20e   :  { %367 = vst.msk [vmem:[#allocation3] sm:$0xff] %vm290_vm2, %v363_v39  ;;  %v4355_v40 = vpop.f32.mrb[1].mxu0 }
 0x215   :  { %v919_v41 = vld [vmem:[#allocation3] sm:$0xff] }
 0x216   :  { %v927_v42 = vsel %vm290_vm2, %v919_v41, -inf }
 0x217   :  { %928 = vmax.xlane.f32.xlu0 %v927_v42 }
 0x281   :  { %v442_v43 = vpop.f32.mrb[4].mxu1 }
 0x282   :  { %446 = vst.msk [vmem:[#allocation3 + $0x8] sm:$0xff] %vm290_vm2, %v442_v43  ;;  %v4360_v44 = vpop.f32.mrb[5].mxu1  ;;  %v521_v45 = vpop.f32.mrb[2].mxu0 }
 0x283   :  { %525 = vst.msk [vmem:[#allocation3 + $0x10] sm:$0xff] %vm290_vm2, %v521_v45  ;;  %v4365_v46 = vpop.f32.mrb[3].mxu0 }
 0x285   :  { %v600_v47 = vpop.f32.mrb[6].mxu1 }
 0x286   :  { %604 = vst.msk [vmem:[#allocation3 + $0x18] sm:$0xff] %vm290_vm2, %v600_v47  ;;  %v4370_v48 = vpop.f32.mrb[7].mxu1  ;;  %v677_v49 = vpop.f32.mrb[4].mxu0 }
 0x287   :  { %681 = vst.msk [vmem:[#allocation3 + $0x20] sm:$0xff] %vm290_vm2, %v677_v49  ;;  %v4375_v50 = vpop.f32.mrb[5].mxu0 }
 0x289   :  { %v756_v51 = vpop.f32.mrb[8].mxu1  ;;  %v920_v52 = vld [vmem:[#allocation3 + $0x8] sm:$0xff] }
 0x28a   :  { %760 = vst.msk [vmem:[#allocation3 + $0x28] sm:$0xff] %vm290_vm2, %v756_v51  ;;  %v4380_v53 = vpop.f32.mrb[9].mxu1  ;;  %v930_v54 = vsel %vm290_vm2, %v920_v52, -inf  ;;  %v921_v55 = vld [vmem:[#allocation3 + $0x10] sm:$0xff] }
 0x28b   :  { %931 = vmax.xlane.f32.xlu1 %v930_v54  ;;  %v933_v56 = vsel %vm290_vm2, %v921_v55, -inf }
 0x28c   :  { %934 = vmax.xlane.f32.xlu0 %v933_v56 }
 0x28d   :  { %v914_v57 = vpop.f32.mrb[10].mxu1  ;;  %v922_v58 = vld [vmem:[#allocation3 + $0x18] sm:$0xff] }
 0x28e   :  { %v835_v59 = vpop.f32.mrb[6].mxu0  ;;  %918 = vst.msk [vmem:[#allocation3 + $0x38] sm:$0xff] %vm290_vm2, %v914_v57  ;;  %v4390_v60 = vpop.f32.mrb[11].mxu1  ;;  %v936_v61 = vsel %vm290_vm2, %v922_v58, -inf  ;;  %v923_v62 = vld [vmem:[#allocation3 + $0x20] sm:$0xff] }
 0x28f   :  { %839 = vst.msk [vmem:[#allocation3 + $0x30] sm:$0xff] %vm290_vm2, %v835_v59  ;;  %v4385_v63 = vpop.f32.mrb[7].mxu0  ;;  %v939_v0 = vsel %vm290_vm2, %v923_v62, -inf }
 0x290   :  { %937 = vmax.xlane.f32.xlu0 %v936_v61  ;;  %940 = vmax.xlane.f32.xlu1 %v939_v0 }
 0x291   :  { %v924_v1 = vld [vmem:[#allocation3 + $0x28] sm:$0xff] }
 0x292   :  { %v942_v2 = vsel %vm290_vm2, %v924_v1, -inf }
 0x294   :  { %943 = vmax.xlane.f32.xlu0 %v942_v2 }
 0x295   :  { %v926_v3 = vld [vmem:[#allocation3 + $0x38] sm:$0xff] }
 0x296   :  { %v948_v4 = vsel %vm290_vm2, %v926_v3, -inf  ;;  %v925_v6 = vld [vmem:[#allocation3 + $0x30] sm:$0xff] }
 0x297   :  { %v945_v7 = vsel %vm290_vm2, %v925_v6, -inf }
 0x298   :  { %949 = vmax.xlane.f32.xlu0 %v948_v4  ;;  %946 = vmax.xlane.f32.xlu1 %v945_v7 }
 0x2a4   :  { %v929_v8 = vpop.xlane.xlu0 %928 }
 0x2a5   :  { %v951_v9 = vsub.f32 %v919_v41, %v929_v8 }
 0x2a7   :  { %v959_v10 = vmul.f32 1.442695, %v951_v9 }
 0x2a9   :  { %1039 = vrot.lane.b32.xlu1 %v5124_v24, %s4916_s2  ;;  %4728 = vpow2.f32 %v959_v10 }
 0x2ad   :  { %1198 = vrot.lane.b32.xlu1 %v5124_v24, %s4917_s23 }
 0x2ae   :  { %1116 = vrot.lane.b32.xlu0 %v5124_v24, %s5725_s24 }
 0x2b1   :  { %1280 = vrot.lane.b32.xlu1 %v5124_v24, %s4919_s30 }
 0x2b2   :  { %1362 = vrot.lane.b32.xlu0 %v5139_v26, %s4916_s2 }
 0x2b3   :  { %v5214_v11 = vpop.eup %4728 }
 0x2b4   :  { %v975_v13 = vsel %vm290_vm2, %v5214_v11, 0.0 }
 0x2b5   :  { %1439 = vrot.lane.b32.xlu1 %v5139_v26, %s5725_s24 }
 0x2d9   :  { %976 = vadd.xlane.f32.xlu1 %v975_v13 }
 0x318   :  { %v932_v17 = vpop.xlane.xlu1 %931 }
 0x319   :  { %v952_v18 = vsub.f32 %v920_v52, %v932_v17  ;;  %v935_v19 = vpop.xlane.xlu0 %934 }
 0x31a   :  { %v953_v20 = vsub.f32 %v921_v55, %v935_v19 }
 0x31b   :  { %v961_v21 = vmul.f32 1.442695, %v952_v18 }
 0x31c   :  { %v963_v22 = vmul.f32 1.442695, %v953_v20 }
 0x31d   :  { %4730 = vpow2.f32 %v961_v21  ;;  %v938_v23 = vpop.xlane.xlu0 %937  ;;  %v941_v24 = vpop.xlane.xlu1 %940 }
 0x31e   :  { %4732 = vpow2.f32 %v963_v22  ;;  %v954_v25 = vsub.f32 %v922_v58, %v938_v23  ;;  %v955_v27 = vsub.f32 %v923_v62, %v941_v24 }
 0x320   :  { %v965_v28 = vmul.f32 1.442695, %v954_v25  ;;  %v967_v29 = vmul.f32 1.442695, %v955_v27 }
 0x321   :  { %v944_v30 = vpop.xlane.xlu0 %943 }
 0x322   :  { %4734 = vpow2.f32 %v965_v28  ;;  %v956_v31 = vsub.f32 %v924_v1, %v944_v30 }
 0x323   :  { %4736 = vpow2.f32 %v967_v29 }
 0x324   :  { %v969_v32 = vmul.f32 1.442695, %v956_v31 }
 0x325   :  { %v950_v33 = vpop.xlane.xlu0 %949  ;;  %v947_v34 = vpop.xlane.xlu1 %946 }
 0x326   :  { %4738 = vpow2.f32 %v969_v32  ;;  %v958_v35 = vsub.f32 %v926_v3, %v950_v33  ;;  %v957_v36 = vsub.f32 %v925_v6, %v947_v34 }
 0x327   :  { %v5218_v37 = vpop.eup %4730 }
 0x328   :  { %v5220_v38 = vpop.eup %4732  ;;  %v973_v39 = vmul.f32 1.442695, %v958_v35  ;;  %v971_v40 = vmul.f32 1.442695, %v957_v36  ;;  %v978_v41 = vsel %vm290_vm2, %v5218_v37, 0.0 }
 0x329   :  { %979 = vadd.xlane.f32.xlu0 %v978_v41  ;;  %v1117_v42 = vpop.permute.xlu0 %1116  ;;  %v1040_v43 = vpop.permute.xlu1 %1039  ;;  %v981_v44 = vsel %vm290_vm2, %v5220_v38, 0.0 }
 0x32a   :  { %4740 = vpow2.f32 %v973_v39  ;;  %4397 = vmatpush3.msra.mxu1 %v1117_v42  ;;  %982 = vadd.xlane.f32.xlu1 %v981_v44 }
 0x32b   :  { %4742 = vpow2.f32 %v971_v40  ;;  %4392 = vmatpush3.msra.mxu0 %v1040_v43  ;;  %4406 = vmatprep.subr.mxu1 %v4911_v16 }
 0x32c   :  { %v5227_v45 = vpop.eup %4734  ;;  %4401 = vmatprep.subr.mxu0 %v4911_v16 }
 0x32d   :  { %v5230_v46 = vpop.eup %4736  ;;  %v984_v47 = vsel %vm290_vm2, %v5227_v45, 0.0  ;;  %v1199_v55 = vpop.permute.xlu1 %1198 }
 0x32e   :  { %985 = vadd.xlane.f32.xlu0 %v984_v47  ;;  %v987_v48 = vsel %vm290_vm2, %v5230_v46, 0.0 }
 0x32f   :  { %988 = vadd.xlane.f32.xlu1 %v987_v48 }
 0x330   :  { %v5236_v49 = vpop.eup %4738 }
 0x331   :  { %v990_v50 = vsel %vm290_vm2, %v5236_v49, 0.0  ;;  %v1281_v56 = vpop.permute.xlu1 %1280 }
 0x332   :  { %991 = vadd.xlane.f32.xlu0 %v990_v50 }
 0x334   :  { %v5240_v51 = vpop.eup %4740 }
 0x335   :  { %v5242_v52 = vpop.eup %4742  ;;  %v996_v53 = vsel %vm290_vm2, %v5240_v51, 0.0  ;;  %v5252_v57 = vpop.permute.xlu1 %1439 }
 0x336   :  { %997 = vadd.xlane.f32.xlu0 %v996_v53  ;;  %v993_v54 = vsel %vm290_vm2, %v5242_v52, 0.0 }
 0x337   :  { %994 = vadd.xlane.f32.xlu1 %v993_v54 }
 0x348   :  { %1601 = vrot.lane.b32.xlu1 %v5139_v26, %s4919_s30 }
 0x34c   :  { %1520 = vrot.lane.b32.xlu0 %v5139_v26, %s4917_s23  ;;  %v1363_v26 = vpop.permute.xlu0 %1362 }
 0x366   :  { %v977_v58 = vpop.xlane.xlu1 %976 }
 0x367   :  { %4744 = vrcp.f32 %v977_v58 }
 0x371   :  { %v4745_v59 = vpop.eup %4744 }
 0x372   :  { %v1007_v60 = vmul.f32 %v4745_v59, %v977_v58 }
 0x374   :  { %v1015_v61 = vsub.f32 2.0, %v1007_v60  ;;  %v1687_v60 = vld [vmem:[%s5707_s6 + $0x18] sm:$0xff] }
 0x376   :  { %v1023_v62 = vmul.f32 %v4745_v59, %v1015_v61  ;;  %v1686_v59 = vld [vmem:[%s5707_s6 + $0x10] sm:$0xff] }
 0x377   :  { %v4635_v61 = vpack.c.bf16 %v1687_v60, %v1686_v59  ;;  %v4113_v60 = vld [vmem:[%s5713_s12] ss:$0 sm:$0xff] }
 0x378   :  { %v1031_v63 = vmul.f32 %v5214_v11, %v1023_v62 }
 0x37a   :  { %4394 = vmatmul.mubr.msk.f32.vlgmr.msra.gmra.mrb[8].mxu0 %vm290_vm2, %v1031_v63 }
 0x37b   :  { %4402 = vmatpush3.msra.mxu0 %v1199_v55  ;;  %4403 = vmatprep.mubr.msk.f32.mxu0 %vm4912_vm1, %v4911_v16 }
 0x37c   :  { %4411 = vmatprep.subr.mxu0 %v4911_v16 }
 0x3b6   :  { %v980_v0 = vpop.xlane.xlu0 %979 }
 0x3b7   :  { %4746 = vrcp.f32 %v980_v0  ;;  %v983_v1 = vpop.xlane.xlu1 %982 }
 0x3b8   :  { %4748 = vrcp.f32 %v983_v1 }
 0x3bb   :  { %v986_v2 = vpop.xlane.xlu0 %985 }
 0x3bc   :  { %4750 = vrcp.f32 %v986_v2  ;;  %v989_v3 = vpop.xlane.xlu1 %988 }
 0x3bd   :  { %4752 = vrcp.f32 %v989_v3 }
 0x3bf   :  { %v992_v4 = vpop.xlane.xlu0 %991 }
 0x3c0   :  { %4754 = vrcp.f32 %v992_v4 }
 0x3c1   :  { %v4747_v6 = vpop.eup %4746 }
 0x3c2   :  { %v4749_v7 = vpop.eup %4748  ;;  %v1008_v8 = vmul.f32 %v4747_v6, %v980_v0 }
 0x3c3   :  { %v1009_v9 = vmul.f32 %v4749_v7, %v983_v1  ;;  %v998_v10 = vpop.xlane.xlu0 %997 }
 0x3c4   :  { %v1016_v11 = vsub.f32 2.0, %v1008_v8  ;;  %4756 = vrcp.f32 %v998_v10  ;;  %v995_v13 = vpop.xlane.xlu1 %994 }
 0x3c5   :  { %v1017_v17 = vsub.f32 2.0, %v1009_v9  ;;  %4758 = vrcp.f32 %v995_v13 }
 0x3c6   :  { %v4751_v18 = vpop.eup %4750  ;;  %v1024_v19 = vmul.f32 %v4747_v6, %v1016_v11 }
 0x3c7   :  { %v4753_v20 = vpop.eup %4752  ;;  %v1025_v21 = vmul.f32 %v4749_v7, %v1017_v17  ;;  %v1010_v22 = vmul.f32 %v4751_v18, %v986_v2  ;;  %v1521_v41 = vpop.permute.xlu0 %1520 }
 0x3c8   :  { %v1032_v23 = vmul.f32 %v5218_v37, %v1024_v19  ;;  %v1011_v24 = vmul.f32 %v4753_v20, %v989_v3 }
 0x3c9   :  { %v1033_v25 = vmul.f32 %v5220_v38, %v1025_v21  ;;  %v1018_v27 = vsub.f32 2.0, %v1010_v22 }
 0x3ca   :  { %v4755_v28 = vpop.eup %4754  ;;  %v1019_v29 = vsub.f32 2.0, %v1011_v24  ;;  %4399 = vmatmul.mubr.msk.f32.vlgmr.msra.gmra.mrb[12].mxu1 %vm290_vm2, %v1032_v23 }
 0x3cb   :  { %v1026_v30 = vmul.f32 %v4751_v18, %v1018_v27  ;;  %v1012_v31 = vmul.f32 %v4755_v28, %v992_v4  ;;  %4407 = vmatpush3.msra.mxu1 %v1281_v56  ;;  %4404 = vmatmul.mubr.msk.f32.vlgmr.msra.gmra.mrb[10].mxu0 %vm290_vm2, %v1033_v25 }
 0x3cc   :  { %v1027_v32 = vmul.f32 %v4753_v20, %v1019_v29  ;;  %4412 = vmatpush3.msra.mxu0 %v1363_v26  ;;  %4408 = vmatprep.mubr.msk.f32.mxu1 %vm4912_vm1, %v4911_v16  ;;  %v4110_v20 = vld [vmem:[%s5708_s7] ss:$0 sm:$0xff] }
 0x3cd   :  { %v1034_v33 = vmul.f32 %v5227_v45, %v1026_v30  ;;  %v1020_v34 = vsub.f32 2.0, %v1012_v31  ;;  %4413 = vmatprep.mubr.msk.f32.mxu0 %vm4912_vm1, %v4911_v16  ;;  %4416 = vmatprep.subr.mxu1 %v4911_v16 }
 0x3ce   :  { %v4757_v35 = vpop.eup %4756  ;;  %v1035_v36 = vmul.f32 %v5230_v46, %v1027_v32  ;;  %4421 = vmatprep.subr.mxu0 %v4911_v16  ;;  %v1602_v46 = vpop.permute.xlu1 %1601 }
 0x3cf   :  { %v4759_v37 = vpop.eup %4758  ;;  %v1028_v38 = vmul.f32 %v4755_v28, %v1020_v34  ;;  %v1014_v39 = vmul.f32 %v4757_v35, %v998_v10  ;;  %4409 = vmatmul.mubr.msk.f32.vlgmr.msra.gmra.mrb[14].mxu1 %vm290_vm2, %v1034_v33 }
 0x3d0   :  { %v1013_v40 = vmul.f32 %v4759_v37, %v995_v13  ;;  %4414 = vmatmul.mubr.msk.f32.vlgmr.msra.gmra.mrb[12].mxu0 %vm290_vm2, %v1035_v36  ;;  %4417 = vmatpush3.msra.mxu1 %v5252_v57  ;;  %v1684_v57 = vld [vmem:[%s5707_s6] sm:$0xff] }
 0x3d1   :  { %v1036_v42 = vmul.f32 %v5236_v49, %v1028_v38  ;;  %v1022_v43 = vsub.f32 2.0, %v1014_v39  ;;  %4422 = vmatpush3.msra.mxu0 %v1521_v41  ;;  %4418 = vmatprep.mubr.msk.f32.mxu1 %vm4912_vm1, %v4911_v16  ;;  %v1824_v39 = vld [vmem:[#allocation9 + $0x8] sm:$0xff]  ;;  %v1825_v41 = vld [vmem:[#allocation9 + $0x10] sm:$0xff] }
 0x3d2   :  { %v1021_v44 = vsub.f32 2.0, %v1013_v40  ;;  %4426 = vmatprep.subr.mxu1 %v4911_v16  ;;  %4423 = vmatprep.mubr.msk.f32.mxu0 %vm4912_vm1, %v4911_v16 }
 0x3d3   :  { %v1030_v45 = vmul.f32 %v4757_v35, %v1022_v43  ;;  %4419 = vmatmul.mubr.msk.f32.vlgmr.msra.gmra.mrb[16].mxu1 %vm290_vm2, %v1036_v42  ;;  %v1826_v42 = vld [vmem:[#allocation9 + $0x18] sm:$0xff] }
 0x3d4   :  { %v1029_v47 = vmul.f32 %v4759_v37, %v1021_v44  ;;  %4427 = vmatpush3.msra.mxu1 %v1602_v46  ;;  %4428 = vmatprep.mubr.msk.f32.mxu1 %vm4912_vm1, %v4911_v16  ;;  %v4643_v43 = vpack.c.bf16 %v1826_v42, %v1825_v41  ;;  %v1917_v44 = vld [vmem:[%s5711_s10] sm:$0xff]  ;;  %v1919_v46 = vld [vmem:[%s5711_s10 + $0x10] sm:$0xff]  ;;  %v4126_v41 = vld [vmem:[%s5739_s27 + $0x38] sm:$0xff] }
 0x3d5   :  { %v1038_v48 = vmul.f32 %v5240_v51, %v1030_v45  ;;  %v1685_v51 = vld [vmem:[%s5707_s6 + $0x8] sm:$0xff] }
 0x3d6   :  { %v1037_v49 = vmul.f32 %v5242_v52, %v1029_v47  ;;  %v4631_v58 = vpack.c.bf16 %v1685_v51, %v1684_v57  ;;  %v1918_v45 = vld [vmem:[%s5711_s10 + $0x8] sm:$0xff] }
 0x3d7   :  { %4429 = vmatmul.mubr.msk.f32.vlgmr.msra.gmra.mrb[18].mxu1 %vm290_vm2, %v1038_v48  ;;  %v4647_v47 = vpack.c.bf16 %v1918_v45, %v1917_v44  ;;  %v1920_v48 = vld [vmem:[%s5711_s10 + $0x18] sm:$0xff]  ;;  %v4132_v44 = vld [vmem:[%s5705_s4 + $0x28] sm:$0xff] }
 0x3d8   :  { %4424 = vmatmul.mubr.msk.f32.vlgmr.msra.gmra.mrb[14].mxu0 %vm290_vm2, %v1037_v49  ;;  %4632 = vmatprep.subr.bf16.mxu0 %v4631_v58  ;;  %v4651_v49 = vpack.c.bf16 %v1920_v48, %v1919_v46 }
 0x3d9   :  { %4634 = vmatpush3.bf16.msra.mxu0 %v4631_v58 }
 0x3da   :  { %4636 = vmatprep.subr.bf16.mxu0 %v4635_v61 }
 0x3dd   :  { %4638 = vmatpush3.bf16.msra.mxu0 %v4635_v61 }
 0x3de   :  { %4648 = vmatprep.subr.bf16.mxu0 %v4647_v47 }
 0x44d   :  { %v1111_v50 = vpop.f32.mrb[8].mxu0 }
 0x44e   :  { %1115 = vst.msk [vmem:[#allocation2] sm:$0xff] %vm290_vm2, %v1111_v50  ;;  %v4395_v53 = vpop.f32.mrb[9].mxu0  ;;  %v1921_v50 = vld [vmem:[%s5711_s10 + $0x20] sm:$0xff] }
 0x44f   :  { %v1922_v53 = vld [vmem:[%s5711_s10 + $0x28] sm:$0xff] }
 0x49d   :  { %v1188_v54 = vpop.f32.mrb[12].mxu1 }
 0x49e   :  { %1193 = vrot.lane.b32.xlu0 %v1188_v54, %s5731_s26  ;;  %v4400_v55 = vpop.f32.mrb[13].mxu1  ;;  %v1270_v56 = vpop.f32.mrb[10].mxu0  ;;  %v4655_v54 = vpack.c.bf16 %v1922_v53, %v1921_v50 }
 0x49f   :  { %1275 = vrot.lane.b32.xlu1 %v1270_v56, %s5729_s19  ;;  %v4405_v52 = vpop.f32.mrb[11].mxu0 }
 0x4a2   :  { %v1352_v62 = vpop.f32.mrb[14].mxu1 }
 0x4a3   :  { %v1434_v63 = vpop.f32.mrb[12].mxu0  ;;  %v4410_v26 = vpop.f32.mrb[15].mxu1  ;;  %1357 = vrot.lane.b32.xlu1 %v1352_v62, %s5727_s20  ;;  %v4114_v62 = vld [vmem:[%s5714_s13] ss:$0 sm:$0xff] }
 0x4a4   :  { %1438 = vst.msk [vmem:[#allocation2 + $0x8] sm:$0xff] %vm290_vm2, %v1434_v63  ;;  %v4415_v0 = vpop.f32.mrb[13].mxu0 }
 0x4a6   :  { %v1511_v1 = vpop.f32.mrb[16].mxu1 }
 0x4a7   :  { %1516 = vrot.lane.b32.xlu0 %v1511_v1, %s5731_s26  ;;  %v4420_v2 = vpop.f32.mrb[17].mxu1 }
 0x4aa   :  { %v1673_v3 = vpop.f32.mrb[18].mxu1 }
 0x4ab   :  { %v1592_v4 = vpop.f32.mrb[14].mxu0  ;;  %v4430_v6 = vpop.f32.mrb[19].mxu1  ;;  %1678 = vrot.lane.b32.xlu1 %v1673_v3, %s5727_s20 }
 0x4ac   :  { %1597 = vrot.lane.b32.xlu0 %v1592_v4, %s5729_s19  ;;  %v4425_v7 = vpop.f32.mrb[15].mxu0  ;;  %v1923_v4 = vld [vmem:[%s5711_s10 + $0x30] sm:$0xff]  ;;  %v1924_v6 = vld [vmem:[%s5711_s10 + $0x38] sm:$0xff] }
 0x4ad   :  { %v4659_v7 = vpack.c.bf16 %v1924_v6, %v1923_v4 }
 0x510   :  { %v1194_v8 = vpop.permute.xlu0 %1193 }
 0x511   :  { %1197 = vst.msk [vmem:[#allocation2] sm:$0xff] %vm1196_vm3, %v1194_v8  ;;  %v1276_v9 = vpop.permute.xlu1 %1275  ;;  %v4115_v8 = vld [vmem:[%s5710_s9] ss:$0 sm:$0xff] }
 0x512   :  { %1279 = vst.msk [vmem:[#allocation2] sm:$0xff] %vm1278_vm4, %v1276_v9 }
 0x515   :  { %v1358_v10 = vpop.permute.xlu1 %1357 }
 0x516   :  { %1361 = vst.msk [vmem:[#allocation2] sm:$0xff] %vm1360_vm5, %v1358_v10 }
 0x519   :  { %v1517_v11 = vpop.permute.xlu0 %1516 }
 0x51a   :  { %1519 = vst.msk [vmem:[#allocation2 + $0x8] sm:$0xff] %vm1196_vm3, %v1517_v11 }
 0x51d   :  { %v1679_v13 = vpop.permute.xlu1 %1678  ;;  %v1682_v17 = vld [vmem:[#allocation2] sm:$0xff] }
 0x51e   :  { %v1598_v18 = vpop.permute.xlu0 %1597  ;;  %4439 = vmatprep.mubr.msk.f32.mxu0 %vm116_vm0, %v1682_v17 }
 0x51f   :  { %1600 = vst.msk [vmem:[#allocation2 + $0x8] sm:$0xff] %vm1278_vm4, %v1598_v18 }
 0x520   :  { %1681 = vst.msk [vmem:[#allocation2 + $0x8] sm:$0xff] %vm1360_vm5, %v1679_v13 }
 0x527   :  { %v1683_v19 = vld [vmem:[#allocation2 + $0x8] sm:$0xff] }
 0x528   :  { %4440 = vmatmul.mubr.msk.f32.vlgmr.msra.gmra.mrb[16].mxu0 %vm116_vm0, %v1683_v19  ;;  %v4118_v19 = vld [vmem:[%s5712_s11] ss:$0 sm:$0xff] }
 0x529   :  { %4650 = vmatpush3.bf16.msra.mxu0 %v4647_v47 }
 0x52a   :  { %4652 = vmatprep.subr.bf16.mxu0 %v4651_v49 }
 0x52d   :  { %4654 = vmatpush3.bf16.msra.mxu0 %v4651_v49 }
 0x52e   :  { %4656 = vmatprep.subr.bf16.mxu0 %v4655_v54 }
 0x531   :  { %4658 = vmatpush3.bf16.msra.mxu0 %v4655_v54 }
 0x532   :  { %4660 = vmatprep.subr.bf16.mxu0 %v4659_v7 }
 0x535   :  { %4662 = vmatpush3.bf16.msra.mxu0 %v4659_v7 }
 0x536   :  { %4494 = vmatprep.subr.mxu0 %v4911_v16 }
 0x5fb   :  { %v4441_v21 = vpop.f32.mrb[16].mxu0 }
 0x5fc   :  { %v1773_v22 = vadd.f32 %v4441_v21, %v4110_v20  ;;  %v1767_v23 = vpop.f32.mrb[17].mxu0 }
 0x5fd   :  { %v1768_v24 = vadd.f32 %v4110_v20, %v1767_v23 }
 0x5fe   :  { %v1777_v25 = vadd.f32 %v1773_v22, %v5098_v12 }
 0x5ff   :  { %v1776_v27 = vadd.f32 %v1768_v24, %v5082_v5  ;;  %v1823_v5 = vld [vmem:[#allocation9] sm:$0xff] }
 0x600   :  { %v1783_v28 = vsel %vm116_vm0, %v1777_v25, 0.0  ;;  %v4639_v40 = vpack.c.bf16 %v1824_v39, %v1823_v5  ;;  %v4124_v5 = vld [vmem:[%s5739_s27 + $0x28] sm:$0xff] }
 0x601   :  { %1784 = vadd.xlane.f32.xlu1 %v1783_v28  ;;  %v1780_v29 = vsel %vm116_vm0, %v1776_v27, 0.0 }
 0x602   :  { %1781 = vadd.xlane.f32.xlu0 %v1780_v29  ;;  %4640 = vmatprep.subr.bf16.mxu1 %v4639_v40 }
 0x603   :  { %4642 = vmatpush3.bf16.msra.mxu1 %v4639_v40  ;;  %v4125_v40 = vld [vmem:[%s5739_s27 + $0x30] sm:$0xff] }
 0x604   :  { %4644 = vmatprep.subr.bf16.mxu1 %v4643_v43  ;;  %v4667_v42 = vpack.c.bf16 %v4126_v41, %v4125_v40 }
 0x607   :  { %4646 = vmatpush3.bf16.msra.mxu1 %v4643_v43  ;;  %v4131_v43 = vld [vmem:[%s5705_s4 + $0x20] sm:$0xff] }
 0x608   :  { %v4671_v45 = vpack.c.bf16 %v4132_v44, %v4131_v43 }
 0x68e   :  { %v1785_v30 = vpop.xlane.xlu1 %1784 }
 0x68f   :  { %v1788_v31 = vmul.f32 0.03125, %v1785_v30  ;;  %v1782_v32 = vpop.xlane.xlu0 %1781 }
 0x690   :  { %v1787_v33 = vmul.f32 0.03125, %v1782_v32 }
 0x691   :  { %v1790_v34 = vsub.f32 %v1777_v25, %v1788_v31 }
 0x692   :  { %v1789_v35 = vsub.f32 %v1776_v27, %v1787_v33 }
 0x693   :  { %v1792_v38 = vmul.f32 %v1790_v34, %v1790_v34 }
 0x694   :  { %v1791_v36 = vmul.f32 %v1789_v35, %v1789_v35 }
 0x695   :  { %v1796_v12 = vsel %vm116_vm0, %v1792_v38, 0.0 }
 0x696   :  { %v1793_v37 = vsel %vm116_vm0, %v1791_v36, 0.0 }
 0x697   :  { %1794 = vadd.xlane.f32.xlu0 %v1793_v37 }
 0x69b   :  { %1797 = vadd.xlane.f32.xlu0 %v1796_v12  ;;  %v4123_v12 = vld [vmem:[%s5739_s27 + $0x20] sm:$0xff] }
 0x69c   :  { %v4663_v39 = vpack.c.bf16 %v4124_v5, %v4123_v12 }
 0x69e   :  { %4664 = vmatprep.subr.bf16.mxu1 %v4663_v39 }
 0x724   :  { %v1795_v55 = vpop.xlane.xlu0 %1794 }
 0x725   :  { %v1799_v56 = vmul.f32 0.03125, %v1795_v55  ;;  %v4121_v55 = vld [vmem:[%s5715_s14] ss:$0 sm:$0xff] }
 0x727   :  { %v1801_v57 = vadd.f32 1e-05, %v1799_v56 }
 0x728   :  { %v1798_v51 = vpop.xlane.xlu0 %1797 }
 0x729   :  { %4760 = vrsqrt.f32 %v1801_v57  ;;  %v1800_v52 = vmul.f32 0.03125, %v1798_v51 }
 0x72b   :  { %v1802_v58 = vadd.f32 1e-05, %v1800_v52  ;;  %v4122_v52 = vld [vmem:[%s5716_s15] ss:$0 sm:$0xff] }
 0x72d   :  { %4762 = vrsqrt.f32 %v1802_v58 }
 0x733   :  { %v4761_v59 = vpop.eup %4760 }
 0x734   :  { %v1805_v61 = vmul.f32 %v4761_v59, %v1789_v35 }
 0x736   :  { %v1813_v63 = vmul.f32 %v4113_v60, %v1805_v61  ;;  %v4134_v61 = vld [vmem:[%s5705_s4 + $0x38] sm:$0xff] }
 0x737   :  { %v4763_v26 = vpop.eup %4762 }
 0x738   :  { %v1806_v0 = vmul.f32 %v4763_v26, %v1790_v34  ;;  %v1821_v1 = vadd.f32 %v4114_v62, %v1813_v63 }
 0x73a   :  { %v1814_v2 = vmul.f32 %v4113_v60, %v1806_v0  ;;  %4450 = vmatprep.mubr.msk.f32.mxu1 %vm116_vm0, %v1821_v1  ;;  %v4133_v60 = vld [vmem:[%s5705_s4 + $0x30] sm:$0xff]  ;;  %v4128_v0 = vld [vmem:[%s5704_s3 + $0x1] ss:$0 sm:$0xff]  ;;  %s5740_s3 = smov 88   ;;  %s4922_s4 = smov [#allocation10]  }
 0x73b   :  { %v4675_v26 = vpack.c.bf16 %v4134_v61, %v4133_v60  ;;  %s4067_s19 = sshll.u32 %s4922_s4, 4  ;;  %s4068_s19 = int_to_ptr.vmem [resolvable:$true] %s4067_s19 }
 0x73c   :  { %v1822_v3 = vadd.f32 %v4114_v62, %v1814_v2  ;;  %s4878_s20 = scalar_lea.vmem %s4068_s19, 256  ;;  %p4883_p11 = scmp.lt.s32.totalorder %s4068_s19, %s4068_s19 }
 0x73d   :  { %p4879_p10 = scmp.ne.s32.totalorder %s4068_s19, %s4878_s20  ;;  %p4884_p12 = scmp.lt.s32.totalorder %s4878_s20, %s4878_s20 }
 0x73e   :  { %4451 = vmatmul.mubr.msk.f32.vlgmr.msra.gmra.mrb[20].mxu1 %vm116_vm0, %v1822_v3 }
 0x73f   :  { %4666 = vmatpush3.bf16.msra.mxu1 %v4663_v39  ;;  %p4885_p13 = por %p4884_p12, %p4883_p11 }
 0x740   :  { %4668 = vmatprep.subr.bf16.mxu1 %v4667_v42 }
 0x741   :  { %p4886_p0 = pnand %p4885_p13, %p4879_p10 }
 0x743   :  { %4670 = vmatpush3.bf16.msra.mxu1 %v4667_v42 }
 0x744   :  { %4672 = vmatprep.subr.bf16.mxu1 %v4671_v45 }
 0x811   :  { %v4452_v9 = vpop.f32.mrb[20].mxu1 }
 0x812   :  { %v1912_v10 = vadd.f32 %v4452_v9, %v4115_v8  ;;  %v1906_v11 = vpop.f32.mrb[21].mxu1 }
 0x813   :  { %v1907_v13 = vadd.f32 %v4115_v8, %v1906_v11 }
 0x814   :  { %v1916_v18 = vmax.f32 %v1912_v10, 0.0 }
 0x815   :  { %v1915_v17 = vmax.f32 %v1907_v13, 0.0 }
 0x817   :  { %4469 = vmatprep.mubr.msk.f32.mxu0 %vm1932_vm6, %v1915_v17 }
 0x818   :  { %4470 = vmatmul.mubr.msk.f32.vlgmr.msra.gmra.mrb[18].mxu0 %vm1932_vm6, %v1916_v18 }
 0x819   :  { %4496 = vmatprep.mubr.msk.f32.mxu0 %vm4912_vm1, %v4911_v16 }
 0x8eb   :  { %v4471_v20 = vpop.f32.mrb[18].mxu0 }
 0x8ec   :  { %v2011_v21 = vadd.f32 %v4471_v20, %v4118_v19  ;;  %v2005_v22 = vpop.f32.mrb[19].mxu0 }
 0x8ed   :  { %v2006_v23 = vadd.f32 %v4118_v19, %v2005_v22 }
 0x8ee   :  { %v2015_v24 = vadd.f32 %v2011_v21, %v1822_v3 }
 0x8ef   :  { %v2014_v25 = vadd.f32 %v2006_v23, %v1821_v1 }
 0x8f0   :  { %v2021_v27 = vsel %vm116_vm0, %v2015_v24, 0.0 }
 0x8f1   :  { %2022 = vadd.xlane.f32.xlu0 %v2021_v27  ;;  %v2018_v28 = vsel %vm116_vm0, %v2014_v25, 0.0 }
 0x8f2   :  { %2019 = vadd.xlane.f32.xlu1 %v2018_v28 }
 0x97e   :  { %v2023_v29 = vpop.xlane.xlu0 %2022 }
 0x97f   :  { %v2025_v30 = vmul.f32 0.03125, %v2023_v29  ;;  %v2020_v31 = vpop.xlane.xlu1 %2019 }
 0x980   :  { %v2024_v32 = vmul.f32 0.03125, %v2020_v31 }
 0x981   :  { %v2027_v33 = vsub.f32 %v2015_v24, %v2025_v30 }
 0x982   :  { %v2026_v34 = vsub.f32 %v2014_v25, %v2024_v32 }
 0x983   :  { %v2029_v35 = vmul.f32 %v2027_v33, %v2027_v33 }
 0x984   :  { %v2028_v36 = vmul.f32 %v2026_v34, %v2026_v34 }
 0x985   :  { %v2033_v37 = vsel %vm116_vm0, %v2029_v35, 0.0 }
 0x986   :  { %2034 = vadd.xlane.f32.xlu0 %v2033_v37  ;;  %v2030_v38 = vsel %vm116_vm0, %v2028_v36, 0.0 }
 0x987   :  { %2031 = vadd.xlane.f32.xlu1 %v2030_v38 }
 0xa13   :  { %v2035_v46 = vpop.xlane.xlu0 %2034 }
 0xa14   :  { %v2037_v47 = vmul.f32 0.03125, %v2035_v46  ;;  %v2032_v48 = vpop.xlane.xlu1 %2031 }
 0xa15   :  { %v2036_v49 = vmul.f32 0.03125, %v2032_v48 }
 0xa16   :  { %v2039_v50 = vadd.f32 1e-05, %v2037_v47 }
 0xa17   :  { %v2038_v53 = vadd.f32 1e-05, %v2036_v49 }
 0xa18   :  { %4764 = vrsqrt.f32 %v2039_v50 }
 0xa19   :  { %4766 = vrsqrt.f32 %v2038_v53 }
 0xa22   :  { %v4765_v54 = vpop.eup %4764 }
 0xa23   :  { %v4767_v56 = vpop.eup %4766  ;;  %v2043_v57 = vmul.f32 %v4765_v54, %v2027_v33 }
 0xa24   :  { %v2042_v51 = vmul.f32 %v4767_v56, %v2026_v34 }
 0xa25   :  { %v2051_v58 = vmul.f32 %v4121_v55, %v2043_v57 }
 0xa26   :  { %v2050_v59 = vmul.f32 %v4121_v55, %v2042_v51 }
 0xa27   :  { %v5403_v63 = vadd.f32 %v4122_v52, %v2051_v58 }
 0xa28   :  { %v5401_v62 = vadd.f32 %v4122_v52, %v2050_v59 }
 0xa2a   :  { %4480 = vmatprep.mubr.msk.f32.mxu1 %vm116_vm0, %v5401_v62 }
 0xa2b   :  { %4481 = vmatmul.mubr.msk.f32.vlgmr.msra.gmra.mrb[22].mxu1 %vm116_vm0, %v5403_v63 }
 0xa2c   :  { %4674 = vmatpush3.bf16.msra.mxu1 %v4671_v45  ;;  %4491 = vmatprep.mubr.msk.f32.mxu1 %vm116_vm0, %v5100_v14  ;;  %v4136_v14 = vld [vmem:[%s5706_s5 + $0x1] ss:$0 sm:$0xff]  ;;  %s5741_s5 = smov 8  }
 0xa2d   :  { %4676 = vmatprep.subr.bf16.mxu1 %v4675_v26 }
 0xa30   :  { %4678 = vmatpush3.bf16.msra.mxu1 %v4675_v26 }
 0xa31   :  { %4499 = vmatprep.subr.mxu1 %v4911_v16 }
 0xa33   :  { %4492 = vmatmul.mubr.msk.f32.vlgmr.msra.gmra.mrb[24].mxu1 %vm116_vm0, %v5106_v15 }
 0xa34   :  { %4501 = vmatprep.mubr.msk.f32.mxu1 %vm4912_vm1, %v4911_v16 }
 0xafe   :  { %v4482_v1 = vpop.f32.mrb[22].mxu1 }
 0xaff   :  { %v2145_v2 = vpop.f32.mrb[23].mxu1  ;;  %v2151_v8 = vadd.f32 %v4482_v1, %v4128_v0 }
 0xb00   :  { %v2146_v3 = vadd.f32 %v4128_v0, %v2145_v2 }
 0xb02   :  { %2477 = vrot.lane.b32.xlu1 %v2146_v3, %s4913_s21  ;;  %2319 = vrot.lane.b32.xlu0 %v2146_v3, %s4914_s22 }
 0xb06   :  { %v4493_v4 = vpop.f32.mrb[24].mxu1  ;;  %2398 = vrot.lane.b32.xlu0 %v2146_v3, %s4915_s29 }
 0xb07   :  { %v2233_v15 = vpop.f32.mrb[25].mxu1  ;;  %v5427_v7 = vadd.f32 %v4493_v4, %v4136_v14 }
 0xb08   :  { %v5425_v6 = vadd.f32 %v4136_v14, %v2233_v15 }
 0xb0a   :  { %4495 = vmatpush3.xpose.msk.msra.mxu0 %vm290_vm2, %v5425_v6  ;;  %2321 = vrot.lane.b32.xlu1 %v5425_v6, %s4914_s22 }
 0xb0b   :  { %2635 = vrot.lane.b32.xlu0 %v5427_v7, %s4914_s22  ;;  %4504 = vmatprep.subr.mxu0 %v4911_v16 }
 0xb0d   :  { %4497 = vmatmul.mubr.msk.f32.vlgmr.msra.gmra.mrb[20].mxu0 %vm290_vm2, %v2146_v3 }
 0xb0e   :  { %2400 = vrot.lane.b32.xlu1 %v5425_v6, %s4915_s29  ;;  %4506 = vmatprep.mubr.msk.f32.mxu0 %vm4912_vm1, %v4911_v16 }
 0xb0f   :  { %2714 = vrot.lane.b32.xlu0 %v5427_v7, %s4915_s29 }
 0xb12   :  { %2479 = vrot.lane.b32.xlu1 %v5425_v6, %s4913_s21 }
 0xb13   :  { %2712 = vrot.lane.b32.xlu0 %v2151_v8, %s4915_s29 }
 0xb16   :  { %2633 = vrot.lane.b32.xlu1 %v2151_v8, %s4914_s22 }
 0xb1a   :  { %2793 = vrot.lane.b32.xlu1 %v5427_v7, %s4913_s21 }
 0xb1e   :  { %2791 = vrot.lane.b32.xlu1 %v2151_v8, %s4913_s21 }
 0xb74   :  { %v2320_v9 = vpop.permute.xlu0 %2319  ;;  %v2478_v10 = vpop.permute.xlu1 %2477 }
 0xb78   :  { %v2399_v11 = vpop.permute.xlu0 %2398 }
 0xb7c   :  { %v2322_v13 = vpop.permute.xlu1 %2321 }
 0xb7d   :  { %4500 = vmatpush3.xpose.msk.msra.mxu1 %vm290_vm2, %v2322_v13  ;;  %v2636_v17 = vpop.permute.xlu0 %2635 }
 0xb7e   :  { %4509 = vmatprep.subr.mxu1 %v4911_v16 }
 0xb80   :  { %v2401_v18 = vpop.permute.xlu1 %2400  ;;  %4502 = vmatmul.mubr.msk.f32.vlgmr.msra.gmra.mrb[26].mxu1 %vm290_vm2, %v2320_v9 }
 0xb81   :  { %4505 = vmatpush3.xpose.msk.msra.mxu0 %vm290_vm2, %v2401_v18  ;;  %4511 = vmatprep.mubr.msk.f32.mxu1 %vm4912_vm1, %v4911_v16  ;;  %v2715_v20 = vpop.permute.xlu0 %2714 }
 0xb82   :  { %4514 = vmatprep.subr.mxu0 %v4911_v16 }
 0xb84   :  { %v2480_v19 = vpop.permute.xlu1 %2479  ;;  %4507 = vmatmul.mubr.msk.f32.vlgmr.msra.gmra.mrb[22].mxu0 %vm290_vm2, %v2399_v11 }
 0xb85   :  { %4510 = vmatpush3.xpose.msk.msra.mxu1 %vm290_vm2, %v2480_v19  ;;  %4515 = vmatpush3.xpose.msk.msra.mxu0 %vm290_vm2, %v5427_v7  ;;  %v2713_v22 = vpop.permute.xlu0 %2712 }
 0xb86   :  { %4516 = vmatprep.mubr.msk.f32.mxu0 %vm4912_vm1, %v4911_v16  ;;  %4519 = vmatprep.subr.mxu1 %v4911_v16 }
 0xb87   :  { %4524 = vmatprep.subr.mxu0 %v4911_v16 }
 0xb88   :  { %v2634_v21 = vpop.permute.xlu1 %2633  ;;  %4512 = vmatmul.mubr.msk.f32.vlgmr.msra.gmra.mrb[28].mxu1 %vm290_vm2, %v2478_v10  ;;  %4517 = vmatmul.mubr.msk.f32.vlgmr.msra.gmra.mrb[24].mxu0 %vm290_vm2, %v2151_v8 }
 0xb89   :  { %4520 = vmatpush3.xpose.msk.msra.mxu1 %vm290_vm2, %v2636_v17  ;;  %4525 = vmatpush3.xpose.msk.msra.mxu0 %vm290_vm2, %v2715_v20 }
 0xb8a   :  { %4521 = vmatprep.mubr.msk.f32.mxu1 %vm4912_vm1, %v4911_v16  ;;  %4526 = vmatprep.mubr.msk.f32.mxu0 %vm4912_vm1, %v4911_v16 }
 0xb8b   :  { %4529 = vmatprep.subr.mxu1 %v4911_v16  ;;  %4534 = vmatprep.subr.mxu0 %v4911_v16 }
 0xb8c   :  { %v2794_v23 = vpop.permute.xlu1 %2793  ;;  %4522 = vmatmul.mubr.msk.f32.vlgmr.msra.gmra.mrb[30].mxu1 %vm290_vm2, %v2634_v21  ;;  %4527 = vmatmul.mubr.msk.f32.vlgmr.msra.gmra.mrb[26].mxu0 %vm290_vm2, %v2713_v22 }
 0xb8d   :  { %4530 = vmatpush3.xpose.msk.msra.mxu1 %vm290_vm2, %v2794_v23  ;;  %4531 = vmatprep.mubr.msk.f32.mxu1 %vm4912_vm1, %v4911_v16 }
 0xb8e   :  { %4539 = vmatprep.subr.mxu1 %v4911_v16  ;;  %4536 = vmatprep.mubr.msk.f32.mxu0 %vm4912_vm1, %v4911_v16 }
 0xb90   :  { %v2792_v24 = vpop.permute.xlu1 %2791 }
 0xb91   :  { %4532 = vmatmul.mubr.msk.f32.vlgmr.msra.gmra.mrb[32].mxu1 %vm290_vm2, %v2792_v24 }
 0xb92   :  { %4541 = vmatprep.mubr.msk.f32.mxu1 %vm4912_vm1, %v4911_v16 }
 0xbe0   :  { %v2314_v25 = vpop.f32.mrb[20].mxu0 }
 0xbe1   :  { %2318 = vst.msk [vmem:[#allocation3] sm:$0xff] %vm290_vm2, %v2314_v25  ;;  %v4498_v27 = vpop.f32.mrb[21].mxu0 }
 0xbe8   :  { %v2870_v28 = vld [vmem:[#allocation3] sm:$0xff] }
 0xbe9   :  { %v2878_v29 = vsel %vm290_vm2, %v2870_v28, -inf }
 0xbea   :  { %2879 = vmax.xlane.f32.xlu0 %v2878_v29 }
 0xc53   :  { %v2393_v30 = vpop.f32.mrb[26].mxu1 }
 0xc54   :  { %2397 = vst.msk [vmem:[#allocation3 + $0x8] sm:$0xff] %vm290_vm2, %v2393_v30  ;;  %v4503_v31 = vpop.f32.mrb[27].mxu1 }
 0xc57   :  { %v2472_v32 = vpop.f32.mrb[22].mxu0 }
 0xc58   :  { %2476 = vst.msk [vmem:[#allocation3 + $0x10] sm:$0xff] %vm290_vm2, %v2472_v32  ;;  %v4508_v33 = vpop.f32.mrb[23].mxu0 }
 0xc5b   :  { %v2551_v34 = vpop.f32.mrb[28].mxu1  ;;  %v2628_v35 = vpop.f32.mrb[24].mxu0  ;;  %v2871_v36 = vld [vmem:[#allocation3 + $0x8] sm:$0xff] }
 0xc5c   :  { %2555 = vst.msk [vmem:[#allocation3 + $0x18] sm:$0xff] %vm290_vm2, %v2551_v34  ;;  %2632 = vst.msk [vmem:[#allocation3 + $0x20] sm:$0xff] %vm290_vm2, %v2628_v35  ;;  %v4513_v37 = vpop.f32.mrb[29].mxu1  ;;  %v4518_v38 = vpop.f32.mrb[25].mxu0  ;;  %v2881_v12 = vsel %vm290_vm2, %v2871_v36, -inf }
 0xc5d   :  { %2882 = vmax.xlane.f32.xlu1 %v2881_v12 }
 0xc5f   :  { %v2707_v5 = vpop.f32.mrb[30].mxu1  ;;  %v2786_v39 = vpop.f32.mrb[26].mxu0  ;;  %v2872_v40 = vld [vmem:[#allocation3 + $0x10] sm:$0xff] }
 0xc60   :  { %2711 = vst.msk [vmem:[#allocation3 + $0x28] sm:$0xff] %vm290_vm2, %v2707_v5  ;;  %2790 = vst.msk [vmem:[#allocation3 + $0x30] sm:$0xff] %vm290_vm2, %v2786_v39  ;;  %v4523_v41 = vpop.f32.mrb[31].mxu1  ;;  %v4528_v42 = vpop.f32.mrb[27].mxu0  ;;  %v2884_v43 = vsel %vm290_vm2, %v2872_v40, -inf }
 0xc61   :  { %2885 = vmax.xlane.f32.xlu0 %v2884_v43 }
 0xc63   :  { %v2873_v44 = vld [vmem:[#allocation3 + $0x18] sm:$0xff]  ;;  %v2874_v45 = vld [vmem:[#allocation3 + $0x20] sm:$0xff] }
 0xc64   :  { %v2865_v46 = vpop.f32.mrb[32].mxu1  ;;  %v2887_v47 = vsel %vm290_vm2, %v2873_v44, -inf  ;;  %v2890_v48 = vsel %vm290_vm2, %v2874_v45, -inf }
 0xc65   :  { %2869 = vst.msk [vmem:[#allocation3 + $0x38] sm:$0xff] %vm290_vm2, %v2865_v46  ;;  %v4533_v49 = vpop.f32.mrb[33].mxu1  ;;  %2888 = vmax.xlane.f32.xlu0 %v2887_v47  ;;  %2891 = vmax.xlane.f32.xlu1 %v2890_v48 }
 0xc67   :  { %v2875_v50 = vld [vmem:[#allocation3 + $0x28] sm:$0xff]  ;;  %v2876_v53 = vld [vmem:[#allocation3 + $0x30] sm:$0xff] }
 0xc68   :  { %v2893_v54 = vsel %vm290_vm2, %v2875_v50, -inf  ;;  %v2896_v55 = vsel %vm290_vm2, %v2876_v53, -inf }
 0xc69   :  { %2894 = vmax.xlane.f32.xlu0 %v2893_v54  ;;  %2897 = vmax.xlane.f32.xlu1 %v2896_v55 }
 0xc6c   :  { %v2877_v56 = vld [vmem:[#allocation3 + $0x38] sm:$0xff] }
 0xc6d   :  { %v2899_v57 = vsel %vm290_vm2, %v2877_v56, -inf }
 0xc6e   :  { %2900 = vmax.xlane.f32.xlu0 %v2899_v57 }
 0xc77   :  { %v2880_v51 = vpop.xlane.xlu0 %2879 }
 0xc78   :  { %v2902_v52 = vsub.f32 %v2870_v28, %v2880_v51 }
 0xc7a   :  { %2990 = vrot.lane.b32.xlu1 %v5425_v6, %s4916_s2  ;;  %v2910_v58 = vmul.f32 1.442695, %v2902_v52 }
 0xc7c   :  { %4768 = vpow2.f32 %v2910_v58 }
 0xc7e   :  { %3148 = vrot.lane.b32.xlu1 %v5425_v6, %s4917_s23 }
 0xc82   :  { %3229 = vrot.lane.b32.xlu1 %v5425_v6, %s4919_s30 }
 0xc84   :  { %3067 = vrot.lane.b32.xlu0 %v5425_v6, %s5740_s3 }
 0xc86   :  { %3387 = vrot.lane.b32.xlu1 %v5427_v7, %s5740_s3  ;;  %v5514_v59 = vpop.eup %4768 }
 0xc87   :  { %v2926_v60 = vsel %vm290_vm2, %v5514_v59, 0.0 }
 0xc88   :  { %3310 = vrot.lane.b32.xlu0 %v5427_v7, %s4916_s2 }
 0xcaa   :  { %2927 = vadd.xlane.f32.xlu1 %v2926_v60 }
 0xcea   :  { %v2883_v61 = vpop.xlane.xlu1 %2882 }
 0xceb   :  { %v2903_v26 = vsub.f32 %v2871_v36, %v2883_v61 }
 0xced   :  { %v2912_v0 = vmul.f32 1.442695, %v2903_v26 }
 0xcee   :  { %v2886_v1 = vpop.xlane.xlu0 %2885 }
 0xcef   :  { %4770 = vpow2.f32 %v2912_v0  ;;  %v2904_v2 = vsub.f32 %v2872_v40, %v2886_v1 }
 0xcf1   :  { %v2914_v3 = vmul.f32 1.442695, %v2904_v2 }
 0xcf2   :  { %v2889_v14 = vpop.xlane.xlu0 %2888  ;;  %v2892_v4 = vpop.xlane.xlu1 %2891 }
 0xcf3   :  { %4772 = vpow2.f32 %v2914_v3  ;;  %v2905_v15 = vsub.f32 %v2873_v44, %v2889_v14  ;;  %v2906_v6 = vsub.f32 %v2874_v45, %v2892_v4 }
 0xcf5   :  { %v2916_v8 = vmul.f32 1.442695, %v2905_v15  ;;  %v2918_v9 = vmul.f32 1.442695, %v2906_v6 }
 0xcf6   :  { %v2895_v10 = vpop.xlane.xlu0 %2894  ;;  %v2898_v11 = vpop.xlane.xlu1 %2897 }
 0xcf7   :  { %4774 = vpow2.f32 %v2916_v8  ;;  %v2907_v13 = vsub.f32 %v2875_v50, %v2895_v10  ;;  %v2908_v17 = vsub.f32 %v2876_v53, %v2898_v11 }
 0xcf8   :  { %4776 = vpow2.f32 %v2918_v9 }
 0xcf9   :  { %v5518_v18 = vpop.eup %4770  ;;  %v2920_v19 = vmul.f32 1.442695, %v2907_v13  ;;  %v2922_v20 = vmul.f32 1.442695, %v2908_v17 }
 0xcfa   :  { %v2991_v21 = vpop.permute.xlu1 %2990  ;;  %v2929_v22 = vsel %vm290_vm2, %v5518_v18, 0.0 }
 0xcfb   :  { %4778 = vpow2.f32 %v2920_v19  ;;  %2930 = vadd.xlane.f32.xlu0 %v2929_v22  ;;  %v2901_v23 = vpop.xlane.xlu0 %2900  ;;  %4535 = vmatpush3.msra.mxu0 %v2991_v21 }
 0xcfc   :  { %4780 = vpow2.f32 %v2922_v20  ;;  %v2909_v24 = vsub.f32 %v2877_v56, %v2901_v23  ;;  %4544 = vmatprep.subr.mxu0 %v4911_v16 }
 0xcfd   :  { %v5523_v25 = vpop.eup %4772 }
 0xcfe   :  { %v2924_v27 = vmul.f32 1.442695, %v2909_v24  ;;  %v2932_v28 = vsel %vm290_vm2, %v5523_v25, 0.0  ;;  %v3149_v5 = vpop.permute.xlu1 %3148 }
 0xcff   :  { %v3068_v29 = vpop.permute.xlu0 %3067  ;;  %2933 = vadd.xlane.f32.xlu1 %v2932_v28 }
 0xd00   :  { %4782 = vpow2.f32 %v2924_v27  ;;  %4540 = vmatpush3.msra.mxu1 %v3068_v29 }
 0xd01   :  { %v5527_v30 = vpop.eup %4774  ;;  %4549 = vmatprep.subr.mxu1 %v4911_v16 }
 0xd02   :  { %v5530_v31 = vpop.eup %4776  ;;  %v2935_v32 = vsel %vm290_vm2, %v5527_v30, 0.0  ;;  %v3230_v39 = vpop.permute.xlu1 %3229 }
 0xd03   :  { %2936 = vadd.xlane.f32.xlu0 %v2935_v32  ;;  %v2938_v33 = vsel %vm290_vm2, %v5530_v31, 0.0 }
 0xd04   :  { %2939 = vadd.xlane.f32.xlu1 %v2938_v33 }
 0xd05   :  { %v5536_v34 = vpop.eup %4778 }
 0xd06   :  { %v5538_v35 = vpop.eup %4780  ;;  %v2941_v36 = vsel %vm290_vm2, %v5536_v34, 0.0  ;;  %v5552_v40 = vpop.permute.xlu1 %3387 }
 0xd07   :  { %2942 = vadd.xlane.f32.xlu0 %v2941_v36  ;;  %v2944_v37 = vsel %vm290_vm2, %v5538_v35, 0.0 }
 0xd08   :  { %2945 = vadd.xlane.f32.xlu1 %v2944_v37 }
 0xd0a   :  { %v5544_v38 = vpop.eup %4782 }
 0xd0b   :  { %v2947_v12 = vsel %vm290_vm2, %v5544_v38, 0.0 }
 0xd0c   :  { %2948 = vadd.xlane.f32.xlu0 %v2947_v12  ;;  %v4163_v12 = vld [vmem:[%s5707_s6 + $0x20] sm:$0xff] }
 0xd19   :  { %3549 = vrot.lane.b32.xlu1 %v5427_v7, %s4919_s30 }
 0xd22   :  { %3468 = vrot.lane.b32.xlu0 %v5427_v7, %s4917_s23  ;;  %v3311_v7 = vpop.permute.xlu0 %3310  ;;  %s5742_s23 = smov 16  }
 0xd37   :  { %v2928_v41 = vpop.xlane.xlu1 %2927 }
 0xd38   :  { %4784 = vrcp.f32 %v2928_v41 }
 0xd42   :  { %v4785_v42 = vpop.eup %4784 }
 0xd43   :  { %v2958_v43 = vmul.f32 %v4785_v42, %v2928_v41 }
 0xd45   :  { %v2966_v44 = vsub.f32 2.0, %v2958_v43 }
 0xd47   :  { %v2974_v45 = vmul.f32 %v4785_v42, %v2966_v44 }
 0xd49   :  { %v2982_v46 = vmul.f32 %v5514_v59, %v2974_v45 }
 0xd4b   :  { %4537 = vmatmul.mubr.msk.f32.vlgmr.msra.gmra.mrb[28].mxu0 %vm290_vm2, %v2982_v46 }
 0xd4c   :  { %4545 = vmatpush3.msra.mxu0 %v3149_v5  ;;  %4546 = vmatprep.mubr.msk.f32.mxu0 %vm4912_vm1, %v4911_v16 }
 0xd4d   :  { %4554 = vmatprep.subr.mxu0 %v4911_v16 }
 0xd88   :  { %v2931_v47 = vpop.xlane.xlu0 %2930 }
 0xd89   :  { %4786 = vrcp.f32 %v2931_v47 }
 0xd8c   :  { %v2934_v48 = vpop.xlane.xlu1 %2933 }
 0xd8d   :  { %4788 = vrcp.f32 %v2934_v48 }
 0xd90   :  { %v2937_v49 = vpop.xlane.xlu0 %2936 }
 0xd91   :  { %4790 = vrcp.f32 %v2937_v49  ;;  %v2940_v50 = vpop.xlane.xlu1 %2939 }
 0xd92   :  { %4792 = vrcp.f32 %v2940_v50 }
 0xd93   :  { %v4787_v53 = vpop.eup %4786 }
 0xd94   :  { %v2959_v54 = vmul.f32 %v4787_v53, %v2931_v47  ;;  %v2943_v55 = vpop.xlane.xlu0 %2942 }
 0xd95   :  { %4794 = vrcp.f32 %v2943_v55  ;;  %v2946_v56 = vpop.xlane.xlu1 %2945 }
 0xd96   :  { %v2967_v57 = vsub.f32 2.0, %v2959_v54  ;;  %4796 = vrcp.f32 %v2946_v56 }
 0xd97   :  { %v4789_v51 = vpop.eup %4788 }
 0xd98   :  { %v2975_v52 = vmul.f32 %v4787_v53, %v2967_v57  ;;  %v2960_v58 = vmul.f32 %v4789_v51, %v2934_v48 }
 0xd99   :  { %v2949_v59 = vpop.xlane.xlu0 %2948 }
 0xd9a   :  { %v2983_v60 = vmul.f32 %v5518_v18, %v2975_v52  ;;  %v2968_v61 = vsub.f32 2.0, %v2960_v58  ;;  %4798 = vrcp.f32 %v2949_v59 }
 0xd9b   :  { %v4791_v26 = vpop.eup %4790 }
 0xd9c   :  { %v4793_v0 = vpop.eup %4792  ;;  %v2976_v1 = vmul.f32 %v4789_v51, %v2968_v61  ;;  %v2961_v2 = vmul.f32 %v4791_v26, %v2937_v49  ;;  %4542 = vmatmul.mubr.msk.f32.vlgmr.msra.gmra.mrb[34].mxu1 %vm290_vm2, %v2983_v60 }
 0xd9d   :  { %v2962_v3 = vmul.f32 %v4793_v0, %v2940_v50  ;;  %4550 = vmatpush3.msra.mxu1 %v3230_v39  ;;  %4551 = vmatprep.mubr.msk.f32.mxu1 %vm4912_vm1, %v4911_v16  ;;  %v4165_v39 = vld [vmem:[%s5707_s6 + $0x30] sm:$0xff] }
 0xd9e   :  { %v2984_v14 = vmul.f32 %v5523_v25, %v2976_v1  ;;  %v2969_v4 = vsub.f32 2.0, %v2961_v2  ;;  %4559 = vmatprep.subr.mxu1 %v4911_v16  ;;  %v3469_v25 = vpop.permute.xlu0 %3468 }
 0xd9f   :  { %v4795_v15 = vpop.eup %4794  ;;  %v2970_v6 = vsub.f32 2.0, %v2962_v3 }
 0xda0   :  { %v4797_v8 = vpop.eup %4796  ;;  %v2977_v9 = vmul.f32 %v4791_v26, %v2969_v4  ;;  %v2963_v10 = vmul.f32 %v4795_v15, %v2943_v55  ;;  %4547 = vmatmul.mubr.msk.f32.vlgmr.msra.gmra.mrb[30].mxu0 %vm290_vm2, %v2984_v14 }
 0xda1   :  { %v2978_v11 = vmul.f32 %v4793_v0, %v2970_v6  ;;  %v2964_v13 = vmul.f32 %v4797_v8, %v2946_v56  ;;  %4555 = vmatpush3.msra.mxu0 %v3311_v7  ;;  %4556 = vmatprep.mubr.msk.f32.mxu0 %vm4912_vm1, %v4911_v16 }
 0xda2   :  { %v2985_v17 = vmul.f32 %v5527_v30, %v2977_v9  ;;  %v2971_v18 = vsub.f32 2.0, %v2963_v10  ;;  %4564 = vmatprep.subr.mxu0 %v4911_v16  ;;  %v3550_v30 = vpop.permute.xlu1 %3549 }
 0xda3   :  { %v2986_v19 = vmul.f32 %v5530_v31, %v2978_v11  ;;  %v2972_v20 = vsub.f32 2.0, %v2964_v13 }
 0xda4   :  { %v4799_v21 = vpop.eup %4798  ;;  %v2979_v22 = vmul.f32 %v4795_v15, %v2971_v18  ;;  %4552 = vmatmul.mubr.msk.f32.vlgmr.msra.gmra.mrb[36].mxu1 %vm290_vm2, %v2985_v17  ;;  %v3776_v18 = vld [vmem:[#allocation9 + $0x28] sm:$0xff] }
 0xda5   :  { %v2980_v23 = vmul.f32 %v4797_v8, %v2972_v20  ;;  %v2965_v24 = vmul.f32 %v4799_v21, %v2949_v59  ;;  %4557 = vmatmul.mubr.msk.f32.vlgmr.msra.gmra.mrb[32].mxu0 %vm290_vm2, %v2986_v19  ;;  %4560 = vmatpush3.msra.mxu1 %v5552_v40  ;;  %v4166_v40 = vld [vmem:[%s5707_s6 + $0x38] sm:$0xff]  ;;  %v4168_v59 = vld [vmem:[%s5708_s7 + $0x1] ss:$0 sm:$0xff] }
 0xda6   :  { %v2987_v27 = vmul.f32 %v5536_v34, %v2979_v22  ;;  %4565 = vmatpush3.msra.mxu0 %v3469_v25  ;;  %4561 = vmatprep.mubr.msk.f32.mxu1 %vm4912_vm1, %v4911_v16  ;;  %v4683_v41 = vpack.c.bf16 %v4166_v40, %v4165_v39  ;;  %v3777_v20 = vld [vmem:[#allocation9 + $0x30] sm:$0xff]  ;;  %v4181_v25 = vld [vmem:[%s5711_s10 + $0x50] sm:$0xff] }
 0xda7   :  { %v2988_v28 = vmul.f32 %v5538_v35, %v2980_v23  ;;  %v2973_v29 = vsub.f32 2.0, %v2965_v24  ;;  %4566 = vmatprep.mubr.msk.f32.mxu0 %vm4912_vm1, %v4911_v16  ;;  %4569 = vmatprep.subr.mxu1 %v4911_v16  ;;  %v4179_v23 = vld [vmem:[%s5711_s10 + $0x40] sm:$0xff]  ;;  %v4180_v24 = vld [vmem:[%s5711_s10 + $0x48] sm:$0xff] }
 0xda8   :  { %4562 = vmatmul.mubr.msk.f32.vlgmr.msra.gmra.mrb[38].mxu1 %vm290_vm2, %v2987_v27  ;;  %v4695_v27 = vpack.c.bf16 %v4180_v24, %v4179_v23  ;;  %v4174_v39 = vld [vmem:[%s5714_s13 + $0x1] ss:$0 sm:$0xff] }
 0xda9   :  { %v2981_v31 = vmul.f32 %v4799_v21, %v2973_v29  ;;  %4567 = vmatmul.mubr.msk.f32.vlgmr.msra.gmra.mrb[34].mxu0 %vm290_vm2, %v2988_v28  ;;  %4570 = vmatpush3.msra.mxu1 %v3550_v30  ;;  %v3778_v21 = vld [vmem:[#allocation9 + $0x38] sm:$0xff]  ;;  %v4182_v28 = vld [vmem:[%s5711_s10 + $0x58] sm:$0xff]  ;;  %v4183_v30 = vld [vmem:[%s5711_s10 + $0x60] sm:$0xff] }
 0xdaa   :  { %4571 = vmatprep.mubr.msk.f32.mxu1 %vm4912_vm1, %v4911_v16  ;;  %v4164_v16 = vld [vmem:[%s5707_s6 + $0x28] sm:$0xff]  ;;  %v4691_v22 = vpack.c.bf16 %v3778_v21, %v3777_v20  ;;  %v4699_v29 = vpack.c.bf16 %v4182_v28, %v4181_v25  ;;  %v4193_v20 = vld [vmem:[%s5715_s14 + $0x1] ss:$0 sm:$0xff] }
 0xdab   :  { %v2989_v32 = vmul.f32 %v5544_v38, %v2981_v31  ;;  %v4679_v5 = vpack.c.bf16 %v4164_v16, %v4163_v12  ;;  %v4184_v31 = vld [vmem:[%s5711_s10 + $0x68] sm:$0xff]  ;;  %v4194_v23 = vld [vmem:[%s5716_s15 + $0x1] ss:$0 sm:$0xff] }
 0xdad   :  { %4572 = vmatmul.mubr.msk.f32.vlgmr.msra.gmra.mrb[40].mxu1 %vm290_vm2, %v2989_v32  ;;  %4680 = vmatprep.subr.bf16.mxu0 %v4679_v5  ;;  %v4703_v32 = vpack.c.bf16 %v4184_v31, %v4183_v30 }
 0xdae   :  { %4682 = vmatpush3.bf16.msra.mxu0 %v4679_v5 }
 0xdaf   :  { %4684 = vmatprep.subr.bf16.mxu0 %v4683_v41 }
 0xdb2   :  { %4686 = vmatpush3.bf16.msra.mxu0 %v4683_v41 }
 0xdb3   :  { %4696 = vmatprep.subr.bf16.mxu0 %v4695_v27 }
 0xe1e   :  { %v3062_v33 = vpop.f32.mrb[28].mxu0 }
 0xe1f   :  { %3066 = vst.msk [vmem:[#allocation2] sm:$0xff] %vm290_vm2, %v3062_v33  ;;  %v4538_v34 = vpop.f32.mrb[29].mxu0 }
 0xe6f   :  { %v3139_v35 = vpop.f32.mrb[34].mxu1 }
 0xe70   :  { %3144 = vrot.lane.b32.xlu0 %v3139_v35, %s5741_s5  ;;  %v4543_v36 = vpop.f32.mrb[35].mxu1 }
 0xe73   :  { %v3220_v37 = vpop.f32.mrb[30].mxu0 }
 0xe74   :  { %3225 = vrot.lane.b32.xlu1 %v3220_v37, %s5742_s23  ;;  %v4548_v38 = vpop.f32.mrb[31].mxu0 }
 0xe75   :  { %v4173_v38 = vld [vmem:[%s5713_s12 + $0x1] ss:$0 sm:$0xff] }
 0xe77   :  { %v3301_v42 = vpop.f32.mrb[36].mxu1 }
 0xe78   :  { %v3382_v43 = vpop.f32.mrb[32].mxu0  ;;  %v4553_v44 = vpop.f32.mrb[37].mxu1  ;;  %3306 = vrot.lane.b32.xlu1 %v3301_v42, %s5743_s25 }
 0xe79   :  { %3386 = vst.msk [vmem:[#allocation2 + $0x8] sm:$0xff] %vm290_vm2, %v3382_v43  ;;  %v4558_v45 = vpop.f32.mrb[33].mxu0 }
 0xe7b   :  { %v3459_v46 = vpop.f32.mrb[38].mxu1 }
 0xe7c   :  { %v3540_v7 = vpop.f32.mrb[34].mxu0  ;;  %3464 = vrot.lane.b32.xlu0 %v3459_v46, %s5741_s5  ;;  %v4563_v47 = vpop.f32.mrb[39].mxu1  ;;  %v4185_v46 = vld [vmem:[%s5711_s10 + $0x70] sm:$0xff] }
 0xe7d   :  { %v4568_v48 = vpop.f32.mrb[35].mxu0 }
 0xe7e   :  { %v4176_v48 = vld [vmem:[%s5710_s9 + $0x1] ss:$0 sm:$0xff] }
 0xe80   :  { %v3621_v49 = vpop.f32.mrb[40].mxu1  ;;  %3545 = vrot.lane.b32.xlu0 %v3540_v7, %s5742_s23  ;;  %v4186_v7 = vld [vmem:[%s5711_s10 + $0x78] sm:$0xff] }
 0xe81   :  { %v4573_v50 = vpop.f32.mrb[41].mxu1  ;;  %3626 = vrot.lane.b32.xlu1 %v3621_v49, %s5743_s25  ;;  %v4707_v47 = vpack.c.bf16 %v4186_v7, %v4185_v46  ;;  %v4195_v46 = vld [vmem:[%s5717_s16] ss:$0 sm:$0xff] }
 0xee2   :  { %v3145_v53 = vpop.permute.xlu0 %3144 }
 0xee3   :  { %3147 = vst.msk [vmem:[#allocation2] sm:$0xff] %vm1196_vm3, %v3145_v53 }
 0xee6   :  { %v3226_v54 = vpop.permute.xlu1 %3225 }
 0xee7   :  { %3228 = vst.msk [vmem:[#allocation2] sm:$0xff] %vm1278_vm4, %v3226_v54 }
 0xeea   :  { %v3307_v55 = vpop.permute.xlu1 %3306 }
 0xeeb   :  { %3309 = vst.msk [vmem:[#allocation2] sm:$0xff] %vm1360_vm5, %v3307_v55 }
 0xeee   :  { %v3465_v56 = vpop.permute.xlu0 %3464 }
 0xeef   :  { %3467 = vst.msk [vmem:[#allocation2 + $0x8] sm:$0xff] %vm1196_vm3, %v3465_v56 }
 0xef2   :  { %v3546_v57 = vpop.permute.xlu0 %3545  ;;  %v3630_v51 = vld [vmem:[#allocation2] sm:$0xff] }
 0xef3   :  { %3548 = vst.msk [vmem:[#allocation2 + $0x8] sm:$0xff] %vm1278_vm4, %v3546_v57  ;;  %4582 = vmatprep.mubr.msk.f32.mxu0 %vm116_vm0, %v3630_v51  ;;  %v3627_v52 = vpop.permute.xlu1 %3626  ;;  %v4188_v57 = vld [vmem:[%s5712_s11 + $0x1] ss:$0 sm:$0xff] }
 0xef4   :  { %3629 = vst.msk [vmem:[#allocation2 + $0x8] sm:$0xff] %vm1360_vm5, %v3627_v52 }
 0xefb   :  { %v3631_v58 = vld [vmem:[#allocation2 + $0x8] sm:$0xff] }
 0xefc   :  { %4583 = vmatmul.mubr.msk.f32.vlgmr.msra.gmra.mrb[36].mxu0 %vm116_vm0, %v3631_v58 }
 0xefd   :  { %4698 = vmatpush3.bf16.msra.mxu0 %v4695_v27 }
 0xefe   :  { %4700 = vmatprep.subr.bf16.mxu0 %v4699_v29 }
 0xf01   :  { %4702 = vmatpush3.bf16.msra.mxu0 %v4699_v29 }
 0xf02   :  { %4704 = vmatprep.subr.bf16.mxu0 %v4703_v32 }
 0xf05   :  { %4706 = vmatpush3.bf16.msra.mxu0 %v4703_v32 }
 0xf06   :  { %4708 = vmatprep.subr.bf16.mxu0 %v4707_v47 }
 0xf09   :  { %4710 = vmatpush3.bf16.msra.mxu0 %v4707_v47 }
 0xfcf   :  { %v4584_v60 = vpop.f32.mrb[36].mxu0 }
 0xfd0   :  { %v3723_v61 = vadd.f32 %v4584_v60, %v4168_v59  ;;  %v3717_v26 = vpop.f32.mrb[37].mxu0 }
 0xfd1   :  { %v3718_v0 = vadd.f32 %v4168_v59, %v3717_v26 }
 0xfd2   :  { %v3727_v1 = vadd.f32 %v3723_v61, %v5403_v63 }
 0xfd3   :  { %v3726_v2 = vadd.f32 %v3718_v0, %v5401_v62  ;;  %v3775_v62 = vld [vmem:[#allocation9 + $0x20] sm:$0xff] }
 0xfd4   :  { %v3735_v3 = vsel %vm116_vm0, %v3727_v1, 0.0  ;;  %v4687_v19 = vpack.c.bf16 %v3776_v18, %v3775_v62 }
 0xfd5   :  { %3736 = vadd.xlane.f32.xlu1 %v3735_v3  ;;  %v3732_v14 = vsel %vm116_vm0, %v3726_v2, 0.0 }
 0xfd6   :  { %3733 = vadd.xlane.f32.xlu0 %v3732_v14  ;;  %4688 = vmatprep.subr.bf16.mxu1 %v4687_v19 }
 0xfd7   :  { %4690 = vmatpush3.bf16.msra.mxu1 %v4687_v19 }
 0xfd8   :  { %4692 = vmatprep.subr.bf16.mxu1 %v4691_v22 }
 0xfdb   :  { %4694 = vmatpush3.bf16.msra.mxu1 %v4691_v22 }
0x1062   :  { %v3737_v4 = vpop.xlane.xlu1 %3736 }
0x1063   :  { %v3739_v15 = vmul.f32 0.03125, %v3737_v4  ;;  %v3734_v6 = vpop.xlane.xlu0 %3733 }
0x1064   :  { %v3738_v8 = vmul.f32 0.03125, %v3734_v6 }
0x1065   :  { %v3741_v9 = vsub.f32 %v3727_v1, %v3739_v15 }
0x1066   :  { %v3740_v10 = vsub.f32 %v3726_v2, %v3738_v8 }
0x1067   :  { %v3743_v17 = vmul.f32 %v3741_v9, %v3741_v9 }
0x1068   :  { %v3742_v11 = vmul.f32 %v3740_v10, %v3740_v10 }
0x1069   :  { %v3747_v63 = vsel %vm116_vm0, %v3743_v17, 0.0 }
0x106a   :  { %v3744_v13 = vsel %vm116_vm0, %v3742_v11, 0.0 }
0x106b   :  { %3745 = vadd.xlane.f32.xlu0 %v3744_v13 }
0x106f   :  { %3748 = vadd.xlane.f32.xlu0 %v3747_v63 }
0x10f8   :  { %v3746_v33 = vpop.xlane.xlu0 %3745 }
0x10f9   :  { %v3750_v34 = vmul.f32 0.03125, %v3746_v33 }
0x10fb   :  { %v3752_v35 = vadd.f32 1e-05, %v3750_v34 }
0x10fc   :  { %v3749_v36 = vpop.xlane.xlu0 %3748 }
0x10fd   :  { %4800 = vrsqrt.f32 %v3752_v35  ;;  %v3751_v37 = vmul.f32 0.03125, %v3749_v36 }
0x10ff   :  { %v3753_v12 = vadd.f32 1e-05, %v3751_v37 }
0x1101   :  { %4802 = vrsqrt.f32 %v3753_v12 }
0x1107   :  { %v4801_v16 = vpop.eup %4800 }
0x1108   :  { %v3756_v5 = vmul.f32 %v4801_v16, %v3740_v10 }
0x110a   :  { %v3764_v40 = vmul.f32 %v4173_v38, %v3756_v5 }
0x110b   :  { %v4803_v41 = vpop.eup %4802 }
0x110c   :  { %v3757_v42 = vmul.f32 %v4803_v41, %v3741_v9  ;;  %v3772_v43 = vadd.f32 %v4174_v39, %v3764_v40 }
0x110e   :  { %v3765_v44 = vmul.f32 %v4173_v38, %v3757_v42  ;;  %4593 = vmatprep.mubr.msk.f32.mxu1 %vm116_vm0, %v3772_v43 }
0x1110   :  { %v3773_v45 = vadd.f32 %v4174_v39, %v3765_v44 }
0x1112   :  { %4594 = vmatmul.mubr.msk.f32.vlgmr.msra.gmra.mrb[42].mxu1 %vm116_vm0, %v3773_v45 }
0x11e5   :  { %v4595_v49 = vpop.f32.mrb[42].mxu1 }
0x11e6   :  { %v3865_v50 = vadd.f32 %v4595_v49, %v4176_v48  ;;  %v3859_v53 = vpop.f32.mrb[43].mxu1  ;;  %v4196_v49 = vld [vmem:[%s5718_s17] ss:$0 sm:$0xff] }
0x11e7   :  { %v3860_v54 = vadd.f32 %v4176_v48, %v3859_v53 }
0x11e8   :  { %v3869_v56 = vmax.f32 %v3865_v50, 0.0 }
0x11e9   :  { %v3868_v55 = vmax.f32 %v3860_v54, 0.0 }
0x11eb   :  { %4612 = vmatprep.mubr.msk.f32.mxu0 %vm1932_vm6, %v3868_v55 }
0x11ec   :  { %4613 = vmatmul.mubr.msk.f32.vlgmr.msra.gmra.mrb[38].mxu0 %vm1932_vm6, %v3869_v56 }
0x12bf   :  { %v4614_v51 = vpop.f32.mrb[38].mxu0 }
0x12c0   :  { %v3965_v52 = vadd.f32 %v4614_v51, %v4188_v57  ;;  %v3959_v58 = vpop.f32.mrb[39].mxu0 }
0x12c1   :  { %v3960_v59 = vadd.f32 %v4188_v57, %v3959_v58 }
0x12c2   :  { %v3969_v60 = vadd.f32 %v3965_v52, %v3773_v45 }
0x12c3   :  { %v3968_v61 = vadd.f32 %v3960_v59, %v3772_v43 }
0x12c4   :  { %v3977_v26 = vsel %vm116_vm0, %v3969_v60, 0.0 }
0x12c5   :  { %3978 = vadd.xlane.f32.xlu0 %v3977_v26  ;;  %v3974_v0 = vsel %vm116_vm0, %v3968_v61, 0.0 }
0x12c6   :  { %3975 = vadd.xlane.f32.xlu1 %v3974_v0 }
0x1352   :  { %v3979_v1 = vpop.xlane.xlu0 %3978 }
0x1353   :  { %v3981_v2 = vmul.f32 0.03125, %v3979_v1  ;;  %v3976_v3 = vpop.xlane.xlu1 %3975 }
0x1354   :  { %v3980_v14 = vmul.f32 0.03125, %v3976_v3 }
0x1355   :  { %v3983_v4 = vsub.f32 %v3969_v60, %v3981_v2 }
0x1356   :  { %v3982_v15 = vsub.f32 %v3968_v61, %v3980_v14 }
0x1357   :  { %v3985_v6 = vmul.f32 %v3983_v4, %v3983_v4 }
0x1358   :  { %v3984_v8 = vmul.f32 %v3982_v15, %v3982_v15 }
0x1359   :  { %v3989_v9 = vsel %vm116_vm0, %v3985_v6, 0.0 }
0x135a   :  { %3990 = vadd.xlane.f32.xlu0 %v3989_v9  ;;  %v3986_v10 = vsel %vm116_vm0, %v3984_v8, 0.0 }
0x135b   :  { %3987 = vadd.xlane.f32.xlu1 %v3986_v10 }
0x13e7   :  { %v3991_v11 = vpop.xlane.xlu0 %3990 }
0x13e8   :  { %v3993_v13 = vmul.f32 0.03125, %v3991_v11  ;;  %v3988_v17 = vpop.xlane.xlu1 %3987 }
0x13e9   :  { %v3992_v63 = vmul.f32 0.03125, %v3988_v17 }
0x13ea   :  { %v3995_v62 = vadd.f32 1e-05, %v3993_v13 }
0x13eb   :  { %v3994_v18 = vadd.f32 1e-05, %v3992_v63 }
0x13ec   :  { %4804 = vrsqrt.f32 %v3995_v62 }
0x13ed   :  { %4806 = vrsqrt.f32 %v3994_v18 }
0x13f6   :  { %v4805_v19 = vpop.eup %4804 }
0x13f7   :  { %v4807_v21 = vpop.eup %4806  ;;  %v3999_v22 = vmul.f32 %v4805_v19, %v3983_v4 }
0x13f8   :  { %v3998_v24 = vmul.f32 %v4807_v21, %v3982_v15 }
0x13f9   :  { %v4007_v25 = vmul.f32 %v4193_v20, %v3999_v22 }
0x13fa   :  { %v4006_v27 = vmul.f32 %v4193_v20, %v3998_v24 }
0x13fb   :  { %v4015_v28 = vadd.f32 %v4194_v23, %v4007_v25 }
0x13fc   :  { %v4014_v29 = vadd.f32 %v4194_v23, %v4006_v27 }
0x13fd   :  { %v4021_v30 = vsel %vm116_vm0, %v4015_v28, 0.0 }
0x13fe   :  { %4022 = vadd.xlane.f32.xlu0 %v4021_v30  ;;  %v4018_v31 = vsel %vm116_vm0, %v4014_v29, 0.0 }
0x13ff   :  { %4019 = vadd.xlane.f32.xlu1 %v4018_v31 }
0x148b   :  { %v4023_v32 = vpop.xlane.xlu0 %4022 }
0x148c   :  { %v4025_v33 = vmul.f32 0.03125, %v4023_v32  ;;  %v4020_v34 = vpop.xlane.xlu1 %4019 }
0x148d   :  { %v4024_v35 = vmul.f32 0.03125, %v4020_v34 }
0x148e   :  { %v4027_v36 = vsub.f32 %v4015_v28, %v4025_v33 }
0x148f   :  { %v4026_v37 = vsub.f32 %v4014_v29, %v4024_v35 }
0x1490   :  { %v4029_v12 = vmul.f32 %v4027_v36, %v4027_v36 }
0x1491   :  { %v4028_v16 = vmul.f32 %v4026_v37, %v4026_v37 }
0x1492   :  { %v4033_v38 = vsel %vm116_vm0, %v4029_v12, 0.0 }
0x1493   :  { %4034 = vadd.xlane.f32.xlu0 %v4033_v38  ;;  %v4030_v5 = vsel %vm116_vm0, %v4028_v16, 0.0 }
0x1494   :  { %4031 = vadd.xlane.f32.xlu1 %v4030_v5 }
0x1520   :  { %v4035_v39 = vpop.xlane.xlu0 %4034 }
0x1521   :  { %v4037_v40 = vmul.f32 0.03125, %v4035_v39  ;;  %v4032_v41 = vpop.xlane.xlu1 %4031 }
0x1522   :  { %v4036_v42 = vmul.f32 0.03125, %v4032_v41 }
0x1523   :  { %v4039_v43 = vadd.f32 1e-05, %v4037_v40 }
0x1524   :  { %v4038_v44 = vadd.f32 1e-05, %v4036_v42 }
0x1525   :  { %4808 = vrsqrt.f32 %v4039_v43 }
0x1526   :  { %4810 = vrsqrt.f32 %v4038_v44 }
0x152f   :  { %v4809_v45 = vpop.eup %4808 }
0x1530   :  { %v4811_v7 = vpop.eup %4810  ;;  %v4043_v47 = vmul.f32 %v4809_v45, %v4027_v36 }
0x1531   :  { %v4042_v48 = vmul.f32 %v4811_v7, %v4026_v37 }
0x1532   :  { %v4051_v50 = vmul.f32 %v4195_v46, %v4043_v47 }
0x1533   :  { %v4050_v53 = vmul.f32 %v4195_v46, %v4042_v48 }
0x1534   :  { %v4059_v54 = vadd.f32 %v4196_v49, %v4051_v50 }
0x1535   :  { %v4058_v55 = vadd.f32 %v4196_v49, %v4050_v53 }
0x1536   :  { %4061 = vst.msk [vmem:[#allocation10 + $0x8] sm:$0xff] %vm116_vm0, %v4059_v54 }
0x1537   :  { %4060 = vst.msk [vmem:[#allocation10] sm:$0xff] %vm116_vm0, %v4058_v55 }
0x1538   :  { %4889 = shalt.err (!%p4886_p0)
}
0x1539   :  { %s5744_s0 = sld [smem:[#allocation17_spill]] }
0x153f   :  { %s4890_s3 = scalar_lea.hbm %s5744_s0, 256 }
0x1540   :  { %p4891_p1 = scmp.ne.s32.totalorder %s5744_s0, %s4890_s3  ;;  %p4894_p2 = scmp.lt.u32.totalorder %s4890_s3, %s5744_s0 }
0x1542   :  { %p4896_p3 = pnand %p4894_p2, %p4891_p1 }
0x1544   :  { %4899 = shalt.err (!%p4896_p3)
}
0x1545   :  { %s5745_s23 = smov 128  }
0x1546   :  { %4073 = dma.vmem_to_hbm [thread:$0]  %s4068_s19, 256, %s5744_s0, [#allocation6], %s5745_s23, %s5745_s23, %s5741_s5  }
0x1547   :  { %4904 = dma.done.wait [#allocation6], 256  }
0x1548   :  { %4905 = vsyncadd [#allocation6], 4294967040 }
0x1549   :  { %4077 = vsyncpa [#allocation5], 1 }
0x154a   :  { %4078 = vsyncpa [#allocation8], 1 }
0x154b   :  { %4079 = vsyncpa [#allocation6], 1 }

</bundles_post_ra>
